<compile_context>
chip_gen: v7x
topology: tpu7x:2x2x1
jax: 0.10.0
libtpu: 0.0.40
codegen_flags: <defaults>
</compile_context>

<pallas_src>
import functools

import jax
import jax.numpy as jnp
from jax.experimental import pallas as pl
from jax.experimental.pallas import tpu as pltpu


def _round_up(v, m):
    return ((v + m - 1) // m) * m


def _vmem_capacity_bytes():
    """Per-core VMEM capacity; conservative fallback (v7x = 64 MiB)."""
    try:
        return int(pltpu.get_tpu_info().vmem_capacity_bytes)
    except Exception:
        return 64 * 1024 * 1024


def _vmem_estimate_bytes(tm, L, d_pad, C, in_bytes):
    """Rough per-kernel VMEM footprint for tile size `tm`."""
    x_bufs = 2 * tm * L * in_bytes                          # x double buffer
    out_bufs = 2 * C * tm * 4                               # out double buffer (f32)
    weights = 2 * ((L * 2 * d_pad + 2 * d_pad) * in_bytes   # wab + bab (pipeline 2x)
                   + C * d_pad * in_bytes + C * 4)          # wct + bc
    interm = tm * 2 * d_pad * 4 * 2 + tm * d_pad * 4        # ab, a/b, gated (f32)
    return x_bufs + out_bufs + weights + interm


def gated_attention_kernel(x_ref, wab_ref, bab_ref, wct_ref, bc_ref,
                           out_t_ref, *, d_pad):
    """One row-tile of the gated-attention head.

    x_ref    : [TM, L]       input tile (compute dtype, fed straight to the MXU)
    wab_ref  : [L, 2*Dp]     fused [Wa | Wb] weight (D zero-padded to Dp lanes)
    bab_ref  : [1, 2*Dp]     fused [ba | bb] bias (f32, zero-padded)
    wct_ref  : [C, Dp]       attention_c weight, [out, in] layout, zero-padded cols
    bc_ref   : [C, 1]        attention_c bias (f32 column vector)
    out_t_ref: [C, TM]       transposed attention logits tile (lane-dense store)
    """
    x = x_ref[...]  # native compute dtype; f32 accumulation via preferred_element_type

    # Single fused MXU pass for both gate branches: [TM, 2*Dp].
    ab = (jnp.dot(x, wab_ref[...], preferred_element_type=jnp.float32)
          + bab_ref[...].astype(jnp.float32))

    za = ab[:, :d_pad]                      # lane-aligned split (Dp % 128 == 0)
    zb = ab[:, d_pad:]
    a = jnp.tanh(za)                        # 1 EUP push per vreg
    # sigmoid(z) == 0.5 * (1 + tanh(z / 2)): 1 EUP push instead of exp + recip.
    b = 0.5 * (1.0 + jnp.tanh(0.5 * zb))
    gated = a * b                           # [TM, Dp] f32; zero on padded lanes

    # attention_c computed transposed so the output store is lane-dense:
    #   [C, Dp] x [TM, Dp]^T -> [C, TM]; the gated transpose rides the XLU.
    gated_c = gated.astype(wct_ref.dtype)
    out_t = jax.lax.dot_general(
        wct_ref[...], gated_c,
        dimension_numbers=(((1,), (1,)), ((), ())),
        preferred_element_type=jnp.float32,
    ) + bc_ref[...].astype(jnp.float32)

    out_t_ref[...] = out_t.astype(out_t_ref.dtype)


@functools.partial(jax.jit, static_argnames=("tile_m", "compute_dtype"))
def gated_attention(x, wa, ba, wb, bb, wc, bc, *, tile_m=1024, compute_dtype=None):
    """Pallas wrapper. Returns (A, x) exactly like the torch module.

    Weights wa/wb/wc are stored as [in_features, out_features] (transposed
    relative to nn.Linear.weight); biases are 1-D. A is returned in f32.
    """
    N, L = x.shape
    D = wa.shape[1]
    C = wc.shape[1]

    cdt = jnp.dtype(x.dtype) if compute_dtype is None else jnp.dtype(compute_dtype)
    in_bytes = cdt.itemsize

    # --- pack weights for the kernel (D padded to a 128-lane multiple) ----
    d_pad = max(128, _round_up(D, 128))

    def pad_cols(w):
        return w if w.shape[1] == d_pad else jnp.pad(w, ((0, 0), (0, d_pad - w.shape[1])))

    # TODO(synk): for repeated inference with static weights, pre-pack these
    # once outside the call instead of re-concatenating per invocation.
    wa_p = pad_cols(wa).astype(cdt)
    wb_p = pad_cols(wb).astype(cdt)
    ba_p = jnp.pad(ba, (0, d_pad - D)) if d_pad != D else ba
    bb_p = jnp.pad(bb, (0, d_pad - D)) if d_pad != D else bb

    wab = jnp.concatenate([wa_p, wb_p], axis=1)                              # [L, 2*Dp]
    bab = jnp.concatenate([ba_p, bb_p], axis=0).reshape(1, 2 * d_pad).astype(jnp.float32)
    wct = pad_cols(wc.T).astype(cdt)                                         # [C, Dp]
    bc2 = bc.reshape(C, 1).astype(jnp.float32)

    x_in = x.astype(cdt) if x.dtype != cdt else x

    # --- row-tile selection ------------------------------------------------
    tm = min(int(tile_m), _round_up(max(N, 1), 128))   # don't over-pad tiny inputs
    if N > 256:
        # Prefer >= 2 tiles so v7x's two TensorCores both get work on the
        # "parallel" grid axis (no-op on single-TC v5e/v6e).
        tm = min(tm, _round_up(pl.cdiv(N, 2), 128))
    tm = max(128, (tm // 128) * 128)

    cap = _vmem_capacity_bytes()
    budget = int(cap * 0.45)                # leave headroom for the rest of the program
    while tm > 128 and _vmem_estimate_bytes(tm, L, d_pad, C, in_bytes) > budget:
        tm -= 128
    # TODO(synk): for very large L (x double-buffer approaching the VMEM budget)
    # add a K (=L) grid axis with an f32 accumulator instead of shrinking tm.

    n_tiles = pl.cdiv(N, tm)
    N_pad = n_tiles * tm
    if N_pad != N:
        x_in = jnp.pad(x_in, ((0, N_pad - N), (0, 0)))

    est = _vmem_estimate_bytes(tm, L, d_pad, C, in_bytes)
    vmem_limit = int(min(max(32 * 1024 * 1024, 2 * est), cap - 4 * 1024 * 1024))

    kernel = functools.partial(gated_attention_kernel, d_pad=d_pad)

    # Weight/bias BlockSpecs have constant index_maps, so they are fetched once;
    # x / out are the only streamed operands.
    out_t = pl.pallas_call(
        kernel,
        out_shape=jax.ShapeDtypeStruct((C, N_pad), jnp.float32),
        grid_spec=pltpu.PrefetchScalarGridSpec(
            num_scalar_prefetch=0,
            grid=(n_tiles,),
            in_specs=[
                pl.BlockSpec((tm, L), lambda i: (i, 0)),          # x tile
                pl.BlockSpec((L, 2 * d_pad), lambda i: (0, 0)),   # fused Wa|Wb
                pl.BlockSpec((1, 2 * d_pad), lambda i: (0, 0)),   # fused ba|bb
                pl.BlockSpec((C, d_pad), lambda i: (0, 0)),       # Wc^T
                pl.BlockSpec((C, 1), lambda i: (0, 0)),           # bc
            ],
            out_specs=pl.BlockSpec((C, tm), lambda i: (0, i)),    # lane-dense
        ),
        compiler_params=pltpu.CompilerParams(
            dimension_semantics=("parallel",),
            vmem_limit_bytes=vmem_limit,
        ),
    )(x_in, wab, bab, wct, bc2)

    A = out_t.T[:N]          # back to the module's [N, C] layout
    return A, x


def _reference(x, wa, ba, wb, bb, wc, bc):
    a = jnp.tanh(x @ wa + ba)
    b = jax.nn.sigmoid(x @ wb + bb)
    return (a * b) @ wc + bc


if __name__ == "__main__":
    # Small but representative shapes: ragged N (padded last tile), D not a
    # multiple of 128 (exercises the lane-padding path), multi-class output.
    N, L, D, C = 300, 256, 192, 3

    key = jax.random.PRNGKey(0)
    kx, kwa, kba, kwb, kbb, kwc, kbc = jax.random.split(key, 7)

    x = jax.random.normal(kx, (N, L), dtype=jnp.float32)
    # "Linear"-style init, weights stored as [in, out].
    wa = jax.random.normal(kwa, (L, D), dtype=jnp.float32) * (1.0 / jnp.sqrt(L))
    ba = jax.random.normal(kba, (D,), dtype=jnp.float32) * 0.01
    wb = jax.random.normal(kwb, (L, D), dtype=jnp.float32) * (1.0 / jnp.sqrt(L))
    bb = jax.random.normal(kbb, (D,), dtype=jnp.float32) * 0.01
    wc = jax.random.normal(kwc, (D, C), dtype=jnp.float32) * (1.0 / jnp.sqrt(D))
    bc = jax.random.normal(kbc, (C,), dtype=jnp.float32) * 0.01

    A, x_out = gated_attention(x, wa, ba, wb, bb, wc, bc)
    jax.block_until_ready((A, x_out))

    # sanity check against pure-JAX reference
    A_ref = _reference(x, wa, ba, wb, bb, wc, bc)
    assert A.shape == (N, C)
    assert x_out.shape == (N, L)
    assert jnp.allclose(A, A_ref, atol=1e-4, rtol=1e-4), (
        float(jnp.max(jnp.abs(A - A_ref))))
    assert jnp.array_equal(x_out, x)

    print("KERNEL_OK")
</pallas_src>

<mosaic_0001>
module attributes {stable_mosaic.version = 11 : i64} {
  func.func @gated_attention_kernel(%arg0: i32, %arg1: memref<256x256xf32, #tpu.memory_space<vmem>>, %arg2: memref<256x512xf32, #tpu.memory_space<vmem>>, %arg3: memref<1x512xf32, #tpu.memory_space<vmem>>, %arg4: memref<3x256xf32, #tpu.memory_space<vmem>>, %arg5: memref<3x1xf32, #tpu.memory_space<vmem>>, %arg6: memref<3x256xf32, #tpu.memory_space<vmem>>) attributes {dimension_semantics = [#tpu.dimension_semantics<parallel>], iteration_bounds = array<i64: 2>, scalar_prefetch = 0 : i64, scratch_operands = 0 : i64, tpu.core_type = #tpu.core_type<tc>, window_params = [{transform_indices = @transform_0, window_bounds = array<i64: 256, 256>}, {pipeline_mode = #tpu.pipeline_mode<synchronous>, transform_indices = @transform_1, window_bounds = array<i64: 256, 512>}, {pipeline_mode = #tpu.pipeline_mode<synchronous>, transform_indices = @transform_2, window_bounds = array<i64: 1, 512>}, {pipeline_mode = #tpu.pipeline_mode<synchronous>, transform_indices = @transform_3, window_bounds = array<i64: 3, 256>}, {pipeline_mode = #tpu.pipeline_mode<synchronous>, transform_indices = @transform_4, window_bounds = array<i64: 3, 1>}, {transform_indices = @transform_5, window_bounds = array<i64: 3, 256>}]} {
    %c0 = arith.constant 0 : index
    %c0_0 = arith.constant 0 : index
    %0 = vector.load %arg1[%c0, %c0_0] : memref<256x256xf32, #tpu.memory_space<vmem>>, vector<256x256xf32>
    %c0_1 = arith.constant 0 : index
    %c0_2 = arith.constant 0 : index
    %1 = vector.load %arg2[%c0_1, %c0_2] : memref<256x512xf32, #tpu.memory_space<vmem>>, vector<256x512xf32>
    %cst = arith.constant dense<0.000000e+00> : vector<256x512xf32>
    %2 = tpu.matmul %0, %1, %cst {dimension_numbers = #tpu.dot_dimension_numbers<[1], [0], [0], [1], [0, 0, 1, 1], [], []>} : vector<256x256xf32>, vector<256x512xf32>, vector<256x512xf32> -> vector<256x512xf32>
    %c0_3 = arith.constant 0 : index
    %c0_4 = arith.constant 0 : index
    %3 = vector.load %arg3[%c0_3, %c0_4] : memref<1x512xf32, #tpu.memory_space<vmem>>, vector<1x512xf32>
    %4 = vector.broadcast %3 : vector<1x512xf32> to vector<256x512xf32>
    %5 = arith.addf %2, %4 : vector<256x512xf32>
    %6 = vector.extract_strided_slice %5 {offsets = [0, 0], sizes = [256, 256], strides = [1, 1]} : vector<256x512xf32> to vector<256x256xf32>
    %7 = vector.extract_strided_slice %5 {offsets = [0, 256], sizes = [256, 256], strides = [1, 1]} : vector<256x512xf32> to vector<256x256xf32>
    %8 = math.tanh %6 : vector<256x256xf32>
    %cst_5 = arith.constant 5.000000e-01 : f32
    %9 = vector.broadcast %cst_5 : f32 to vector<256x256xf32>
    %10 = arith.mulf %9, %7 : vector<256x256xf32>
    %11 = math.tanh %10 : vector<256x256xf32>
    %cst_6 = arith.constant 1.000000e+00 : f32
    %12 = vector.broadcast %cst_6 : f32 to vector<256x256xf32>
    %13 = arith.addf %12, %11 : vector<256x256xf32>
    %cst_7 = arith.constant 5.000000e-01 : f32
    %14 = vector.broadcast %cst_7 : f32 to vector<256x256xf32>
    %15 = arith.mulf %14, %13 : vector<256x256xf32>
    %16 = arith.mulf %8, %15 : vector<256x256xf32>
    %c0_8 = arith.constant 0 : index
    %c0_9 = arith.constant 0 : index
    %17 = vector.load %arg4[%c0_8, %c0_9] : memref<3x256xf32, #tpu.memory_space<vmem>>, vector<3x256xf32>
    %cst_10 = arith.constant dense<0.000000e+00> : vector<3x256xf32>
    %18 = tpu.matmul %17, %16, %cst_10 {dimension_numbers = #tpu.dot_dimension_numbers<[1], [1], [0], [0], [0, 0, 1, 0], [], []>} : vector<3x256xf32>, vector<256x256xf32>, vector<3x256xf32> -> vector<3x256xf32>
    %c0_11 = arith.constant 0 : index
    %c0_12 = arith.constant 0 : index
    %19 = vector.load %arg5[%c0_11, %c0_12] : memref<3x1xf32, #tpu.memory_space<vmem>>, vector<3x1xf32>
    %20 = vector.broadcast %19 : vector<3x1xf32> to vector<3x256xf32>
    %21 = arith.addf %18, %20 : vector<3x256xf32>
    %c0_13 = arith.constant 0 : index
    %c0_14 = arith.constant 0 : index
    %22 = vector.load %arg6[%c0_13, %c0_14] : memref<3x256xf32, #tpu.memory_space<vmem>>, vector<3x256xf32>
    tpu.vector_store %arg6[%c0_13, %c0_14], %21 {strides = array<i32>} : memref<3x256xf32, #tpu.memory_space<vmem>>, vector<3x256xf32>,
    return
  }
  func.func @transform_0(%arg0: i32) -> (i32, i32) {
    %c0_i32 = arith.constant 0 : i32
    %c0_i32_0 = arith.constant 0 : i32
    return %arg0, %c0_i32 : i32, i32
  }
  func.func @transform_1(%arg0: i32) -> (i32, i32) {
    %c0_i32 = arith.constant 0 : i32
    %c0_i32_0 = arith.constant 0 : i32
    %c0_i32_1 = arith.constant 0 : i32
    return %c0_i32, %c0_i32_0 : i32, i32
  }
  func.func @transform_2(%arg0: i32) -> (i32, i32) {
    %c0_i32 = arith.constant 0 : i32
    %c0_i32_0 = arith.constant 0 : i32
    %c0_i32_1 = arith.constant 0 : i32
    return %c0_i32, %c0_i32_0 : i32, i32
  }
  func.func @transform_3(%arg0: i32) -> (i32, i32) {
    %c0_i32 = arith.constant 0 : i32
    %c0_i32_0 = arith.constant 0 : i32
    %c0_i32_1 = arith.constant 0 : i32
    return %c0_i32, %c0_i32_0 : i32, i32
  }
  func.func @transform_4(%arg0: i32) -> (i32, i32) {
    %c0_i32 = arith.constant 0 : i32
    %c0_i32_0 = arith.constant 0 : i32
    %c0_i32_1 = arith.constant 0 : i32
    return %c0_i32, %c0_i32_0 : i32, i32
  }
  func.func @transform_5(%arg0: i32) -> (i32, i32) {
    %c0_i32 = arith.constant 0 : i32
    %c0_i32_0 = arith.constant 0 : i32
    return %c0_i32, %arg0 : i32, i32
  }
}

</mosaic_0001>

<bundles_post_ra>
// kernel: gated_attention.1
= control target key start
LH: loop header
LB: loop body
LE: loop exit
PB: predicated region body
PF: predicated region fallthrough
CT: control target
= control target key end

     0   :  { %s1996_s18 = smov 0   ;;  %s2828_s0 = inlined_call_operand.vmem [shape: f32[512,256], index: 0, kind: input, shape index: {}]   ;;  %s2829_s1 = inlined_call_operand.vmem [shape: f32[256,512], index: 1, kind: input, shape index: {}]   ;;  %s2830_s2 = inlined_call_operand.vmem [shape: f32[1,512], index: 2, kind: input, shape index: {}]   ;;  %s2831_s3 = inlined_call_operand.vmem [shape: f32[3,256], index: 3, kind: input, shape index: {}]   ;;  %s2832_s4 = inlined_call_operand.vmem [shape: f32[3,1], index: 4, kind: input, shape index: {}]   ;;  %s2833_s5 = inlined_call_operand.vmem [shape: f32[3,512], index: 5, kind: output, shape index: {}]  }
   0x1 LB: > { %s1485_s19 = sadd.s32 4294967295, %s1963_s18   ;;  %p1489_p0 = scmp.ge.s32.totalorder %s1963_s18, 1  ;;  %s1963_s18 = sphi %s1996_s18, %s15_s18  }
   0x2   : > { %p189_p1 = scmp.lt.s32.totalorder %s1963_s18, 3 }
   0x4   : > { %p190_p2 = pnand %p1489_p0, %p189_p1 }
   0x5   : > { %v298_v0 = vld [vmem:[%s2829_s1 + $0x18] sm:$0xff] (!%p190_p2)  ;;  %v297_v2 = vld [vmem:[%s2829_s1 + $0x10] sm:$0xff] (!%p190_p2)  ;;  %v296_v9 = vld [vmem:[%s2829_s1 + $0x8] sm:$0xff] (!%p190_p2)  ;;  %s2186_s25 = sshll.u32 (!%p190_p2), %s1485_s19, 5  ;;  %s1493_s12 = sshll.u32 (!%p190_p2), %s1485_s19, 1 }
   0x6   : > { %193 = sbr.rel (%p190_p2) target bundleno = 671 (0x29f), region = 40  ;;  %v302_v1 = vld [vmem:[%s2829_s1 + $0x38] sm:$0xff] (!%p190_p2)  ;;  %v301_v4 = vld [vmem:[%s2829_s1 + $0x30] sm:$0xff] (!%p190_p2)  ;;  %v300_v10 = vld [vmem:[%s2829_s1 + $0x28] sm:$0xff] (!%p190_p2)  ;;  %p219_p3 = scmp.lt.s32.totalorder (!%p190_p2), %s2186_s25, 63 }
   0x7   : > { %v1562_v3 = vpack.c.bf16 (!%p190_p2), %v302_v1, %v298_v0  ;;  %v306_v5 = vld [vmem:[%s2829_s1 + $0x58] sm:$0xff] (!%p190_p2)  ;;  %v1564_v7 = vpack.c.bf16 (!%p190_p2), %v301_v4, %v297_v2  ;;  %v305_v11 = vld [vmem:[%s2829_s1 + $0x50] sm:$0xff] (!%p190_p2)  ;;  %v1498_v12 = vpack.c.bf16 (!%p190_p2), %v300_v10, %v296_v9  ;;  %v295_v14 = vld [vmem:[%s2829_s1] sm:$0xff] (!%p190_p2)  ;;  %p226_p4 = scmp.lt.s32.totalorder (!%p190_p2), %s1493_s12, 3 }
   0x8   : > { %v310_v6 = vld [vmem:[%s2829_s1 + $0x78] sm:$0xff] (!%p190_p2)  ;;  %v309_v13 = vld [vmem:[%s2829_s1 + $0x70] sm:$0xff] (!%p190_p2)  ;;  %v299_v15 = vld [vmem:[%s2829_s1 + $0x20] sm:$0xff] (!%p190_p2) }
   0x9   : > { %v1566_v8 = vpack.c.bf16 (!%p190_p2), %v310_v6, %v306_v5  ;;  %1563 = vmatprep.subr.bf16.mxu1 (!%p190_p2), %v1562_v3  ;;  %v1568_v16 = vpack.c.bf16 (!%p190_p2), %v309_v13, %v305_v11  ;;  %v1500_v17 = vpack.c.bf16 (!%p190_p2), %v299_v15, %v295_v14  ;;  %v314_v18 = vld [vmem:[%s2829_s1 + $0x98] sm:$0xff] (!%p190_p2)  ;;  %v304_v20 = vld [vmem:[%s2829_s1 + $0x48] sm:$0xff] (!%p190_p2)  ;;  %1499 = vmatprep.subr.bf16.mxu0 (!%p190_p2), %v1498_v12  ;;  %v313_v23 = vld [vmem:[%s2829_s1 + $0x90] sm:$0xff] (!%p190_p2) }
   0xa   : > { %1565 = vmatpush1.bf16.msra.mxu1 (!%p190_p2), %v1564_v7  ;;  %v318_v19 = vld [vmem:[%s2829_s1 + $0xb8] sm:$0xff] (!%p190_p2)  ;;  %v308_v22 = vld [vmem:[%s2829_s1 + $0x68] sm:$0xff] (!%p190_p2)  ;;  %v317_v24 = vld [vmem:[%s2829_s1 + $0xb0] sm:$0xff] (!%p190_p2) }
   0xb   : > { %1567 = vmatprep.subr.bf16.mxu1 (!%p190_p2), %v1566_v8  ;;  %v1570_v21 = vpack.c.bf16 (!%p190_p2), %v318_v19, %v314_v18  ;;  %1501 = vmatpush1.bf16.msra.mxu0 (!%p190_p2), %v1500_v17  ;;  %v1502_v25 = vpack.c.bf16 (!%p190_p2), %v308_v22, %v304_v20  ;;  %v303_v26 = vld [vmem:[%s2829_s1 + $0x40] sm:$0xff] (!%p190_p2)  ;;  %v322_v28 = vld [vmem:[%s2829_s1 + $0xd8] sm:$0xff] (!%p190_p2)  ;;  %v312_v31 = vld [vmem:[%s2829_s1 + $0x88] sm:$0xff] (!%p190_p2)  ;;  %v1572_v33 = vpack.c.bf16 (!%p190_p2), %v317_v24, %v313_v23 }
   0xc   : > { %v307_v27 = vld [vmem:[%s2829_s1 + $0x60] sm:$0xff] (!%p190_p2)  ;;  %v326_v30 = vld [vmem:[%s2829_s1 + $0xf8] sm:$0xff] (!%p190_p2)  ;;  %v316_v32 = vld [vmem:[%s2829_s1 + $0xa8] sm:$0xff] (!%p190_p2) }
   0xd   : > { %v1504_v29 = vpack.c.bf16 %v307_v27, %v303_v26  ;;  %1503 = vmatprep.subr.bf16.mxu0 %v1502_v25  ;;  %v1506_v34 = vpack.c.bf16 %v316_v32, %v312_v31  ;;  %v321_v35 = vld [vmem:[%s2829_s1 + $0xd0] sm:$0xff]  ;;  %v311_v36 = vld [vmem:[%s2829_s1 + $0x80] sm:$0xff]  ;;  %v1574_v37 = vpack.c.bf16 %v326_v30, %v322_v28  ;;  %v330_v40 = vld [vmem:[%s2829_s1 + $0x118] sm:$0xff]  ;;  %s2835_s25 = smov (!%p219_p3, %s2186_s25), 63  ;;  %s2837_s12 = smov (!%p226_p4, %s1493_s12), 3 }
   0xe   : > { %1569 = vmatpush1.bf16.msra.mxu1 %v1568_v16  ;;  %v325_v38 = vld [vmem:[%s2829_s1 + $0xf0] sm:$0xff]  ;;  %v315_v39 = vld [vmem:[%s2829_s1 + $0xa0] sm:$0xff]  ;;  %v334_v42 = vld [vmem:[%s2829_s1 + $0x138] sm:$0xff]  ;;  %s1497_s26 = sshll.u32 %s2835_s25, 4  ;;  %s1494_s13 = sshll.u32 %s2837_s12, 2 }
   0xf   : > { %1571 = vmatprep.subr.bf16.mxu1 %v1570_v21  ;;  %1505 = vmatpush1.bf16.msra.mxu0 %v1504_v29  ;;  %v1508_v41 = vpack.c.bf16 %v315_v39, %v311_v36  ;;  %v320_v43 = vld [vmem:[%s2829_s1 + $0xc8] sm:$0xff]  ;;  %v319_v46 = vld [vmem:[%s2829_s1 + $0xc0] sm:$0xff]  ;;  %v1576_v48 = vpack.c.bf16 %v325_v38, %v321_v35  ;;  %v1578_v50 = vpack.c.bf16 %v334_v42, %v330_v40  ;;  %v329_v51 = vld [vmem:[%s2829_s1 + $0x110] sm:$0xff]  ;;  %s2282_s15 = scalar_lea.vmem %s2828_s0, %s1497_s26  ;;  %s229_s17 = scalar_lea.vmem %s2833_s5, %s1494_s13 }
  0x10   : > { %v324_v44 = vld [vmem:[%s2829_s1 + $0xe8] sm:$0xff]  ;;  %1507 = vmatprep.subr.bf16.mxu0 %v1506_v34  ;;  %v323_v47 = vld [vmem:[%s2829_s1 + $0xe0] sm:$0xff]  ;;  %v333_v52 = vld [vmem:[%s2829_s1 + $0x130] sm:$0xff] }
  0x11   : > { %v1510_v45 = vpack.c.bf16 %v324_v44, %v320_v43  ;;  %v328_v49 = vld [vmem:[%s2829_s1 + $0x108] sm:$0xff]  ;;  %v1512_v54 = vpack.c.bf16 %v323_v47, %v319_v46  ;;  %v338_v55 = vld [vmem:[%s2829_s1 + $0x158] sm:$0xff]  ;;  %v327_v58 = vld [vmem:[%s2829_s1 + $0x100] sm:$0xff]  ;;  %v1580_v60 = vpack.c.bf16 %v333_v52, %v329_v51 }
  0x12   : > { %1573 = vmatpush1.bf16.msra.mxu1 %v1572_v33  ;;  %v332_v53 = vld [vmem:[%s2829_s1 + $0x128] sm:$0xff]  ;;  %v342_v56 = vld [vmem:[%s2829_s1 + $0x178] sm:$0xff]  ;;  %v331_v59 = vld [vmem:[%s2829_s1 + $0x120] sm:$0xff] }
  0x13   : > { %1575 = vmatprep.subr.bf16.mxu1 %v1574_v37  ;;  %1509 = vmatpush1.bf16.msra.mxu0 %v1508_v41  ;;  %v1514_v57 = vpack.c.bf16 %v332_v53, %v328_v49  ;;  %v336_v61 = vld [vmem:[%s2829_s1 + $0x148] sm:$0xff]  ;;  %v1582_v63 = vpack.c.bf16 %v342_v56, %v338_v55  ;;  %v337_v0 = vld [vmem:[%s2829_s1 + $0x150] sm:$0xff]  ;;  %v1516_v2 = vpack.c.bf16 %v331_v59, %v327_v58  ;;  %v346_v3 = vld [vmem:[%s2829_s1 + $0x198] sm:$0xff] }
  0x14   : > { %1511 = vmatprep.subr.bf16.mxu0 %v1510_v45  ;;  %v340_v62 = vld [vmem:[%s2829_s1 + $0x168] sm:$0xff]  ;;  %v341_v1 = vld [vmem:[%s2829_s1 + $0x170] sm:$0xff]  ;;  %v350_v4 = vld [vmem:[%s2829_s1 + $0x1b8] sm:$0xff] }
  0x15   : > { %v1518_v5 = vpack.c.bf16 %v340_v62, %v336_v61  ;;  %v335_v6 = vld [vmem:[%s2829_s1 + $0x140] sm:$0xff]  ;;  %v1584_v8 = vpack.c.bf16 %v341_v1, %v337_v0  ;;  %v344_v9 = vld [vmem:[%s2829_s1 + $0x188] sm:$0xff]  ;;  %v1586_v11 = vpack.c.bf16 %v350_v4, %v346_v3  ;;  %v345_v12 = vld [vmem:[%s2829_s1 + $0x190] sm:$0xff] }
  0x16   : > { %1577 = vmatpush1.bf16.msra.mxu1 %v1576_v48  ;;  %v339_v7 = vld [vmem:[%s2829_s1 + $0x160] sm:$0xff]  ;;  %v348_v10 = vld [vmem:[%s2829_s1 + $0x1a8] sm:$0xff]  ;;  %v349_v13 = vld [vmem:[%s2829_s1 + $0x1b0] sm:$0xff] }
  0x17   : > { %1579 = vmatprep.subr.bf16.mxu1 %v1578_v50  ;;  %1513 = vmatpush1.bf16.msra.mxu0 %v1512_v54  ;;  %v1520_v14 = vpack.c.bf16 %v339_v7, %v335_v6  ;;  %v354_v15 = vld [vmem:[%s2829_s1 + $0x1d8] sm:$0xff]  ;;  %v1522_v17 = vpack.c.bf16 %v348_v10, %v344_v9  ;;  %v343_v18 = vld [vmem:[%s2829_s1 + $0x180] sm:$0xff]  ;;  %v1588_v20 = vpack.c.bf16 %v349_v13, %v345_v12  ;;  %v352_v21 = vld [vmem:[%s2829_s1 + $0x1c8] sm:$0xff] }
  0x18   : > { %1515 = vmatprep.subr.bf16.mxu0 %v1514_v57  ;;  %v358_v16 = vld [vmem:[%s2829_s1 + $0x1f8] sm:$0xff]  ;;  %v347_v19 = vld [vmem:[%s2829_s1 + $0x1a0] sm:$0xff]  ;;  %v356_v22 = vld [vmem:[%s2829_s1 + $0x1e8] sm:$0xff] }
  0x19   : > { %v1590_v23 = vpack.c.bf16 %v358_v16, %v354_v15  ;;  %v353_v24 = vld [vmem:[%s2829_s1 + $0x1d0] sm:$0xff]  ;;  %v1524_v26 = vpack.c.bf16 %v347_v19, %v343_v18  ;;  %v362_v27 = vld [vmem:[%s2829_s1 + $0x218] sm:$0xff]  ;;  %v1526_v29 = vpack.c.bf16 %v356_v22, %v352_v21  ;;  %v351_v30 = vld [vmem:[%s2829_s1 + $0x1c0] sm:$0xff] }
  0x1a   : > { %1581 = vmatpush1.bf16.msra.mxu1 %v1580_v60  ;;  %v357_v25 = vld [vmem:[%s2829_s1 + $0x1f0] sm:$0xff]  ;;  %v366_v28 = vld [vmem:[%s2829_s1 + $0x238] sm:$0xff]  ;;  %v355_v31 = vld [vmem:[%s2829_s1 + $0x1e0] sm:$0xff] }
  0x1b   : > { %1583 = vmatprep.subr.bf16.mxu1 %v1582_v63  ;;  %1517 = vmatpush1.bf16.msra.mxu0 %v1516_v2  ;;  %v1592_v32 = vpack.c.bf16 %v357_v25, %v353_v24  ;;  %v360_v33 = vld [vmem:[%s2829_s1 + $0x208] sm:$0xff]  ;;  %v1594_v35 = vpack.c.bf16 %v366_v28, %v362_v27  ;;  %v361_v36 = vld [vmem:[%s2829_s1 + $0x210] sm:$0xff]  ;;  %v1528_v38 = vpack.c.bf16 %v355_v31, %v351_v30  ;;  %v370_v39 = vld [vmem:[%s2829_s1 + $0x258] sm:$0xff] }
  0x1c   : > { %1519 = vmatprep.subr.bf16.mxu0 %v1518_v5  ;;  %v364_v34 = vld [vmem:[%s2829_s1 + $0x228] sm:$0xff]  ;;  %v365_v37 = vld [vmem:[%s2829_s1 + $0x230] sm:$0xff]  ;;  %v374_v40 = vld [vmem:[%s2829_s1 + $0x278] sm:$0xff] }
  0x1d   : > { %v1530_v41 = vpack.c.bf16 %v364_v34, %v360_v33  ;;  %v359_v42 = vld [vmem:[%s2829_s1 + $0x200] sm:$0xff]  ;;  %v1596_v44 = vpack.c.bf16 %v365_v37, %v361_v36  ;;  %v368_v45 = vld [vmem:[%s2829_s1 + $0x248] sm:$0xff]  ;;  %v1598_v47 = vpack.c.bf16 %v374_v40, %v370_v39  ;;  %v369_v48 = vld [vmem:[%s2829_s1 + $0x250] sm:$0xff] }
  0x1e   : > { %1585 = vmatpush1.bf16.msra.mxu1 %v1584_v8  ;;  %v363_v43 = vld [vmem:[%s2829_s1 + $0x220] sm:$0xff]  ;;  %v372_v46 = vld [vmem:[%s2829_s1 + $0x268] sm:$0xff]  ;;  %v373_v49 = vld [vmem:[%s2829_s1 + $0x270] sm:$0xff] }
  0x1f   : > { %1587 = vmatprep.subr.bf16.mxu1 %v1586_v11  ;;  %1521 = vmatpush1.bf16.msra.mxu0 %v1520_v14  ;;  %v1532_v50 = vpack.c.bf16 %v363_v43, %v359_v42  ;;  %v378_v51 = vld [vmem:[%s2829_s1 + $0x298] sm:$0xff]  ;;  %v1534_v53 = vpack.c.bf16 %v372_v46, %v368_v45  ;;  %v367_v54 = vld [vmem:[%s2829_s1 + $0x240] sm:$0xff]  ;;  %v1600_v56 = vpack.c.bf16 %v373_v49, %v369_v48  ;;  %v376_v57 = vld [vmem:[%s2829_s1 + $0x288] sm:$0xff] }
  0x20   : > { %1523 = vmatprep.subr.bf16.mxu0 %v1522_v17  ;;  %v382_v52 = vld [vmem:[%s2829_s1 + $0x2b8] sm:$0xff]  ;;  %v371_v55 = vld [vmem:[%s2829_s1 + $0x260] sm:$0xff]  ;;  %v380_v58 = vld [vmem:[%s2829_s1 + $0x2a8] sm:$0xff] }
  0x21   : > { %v1602_v59 = vpack.c.bf16 %v382_v52, %v378_v51  ;;  %v377_v60 = vld [vmem:[%s2829_s1 + $0x290] sm:$0xff]  ;;  %v1536_v62 = vpack.c.bf16 %v371_v55, %v367_v54  ;;  %v386_v63 = vld [vmem:[%s2829_s1 + $0x2d8] sm:$0xff]  ;;  %v1538_v1 = vpack.c.bf16 %v380_v58, %v376_v57  ;;  %v375_v2 = vld [vmem:[%s2829_s1 + $0x280] sm:$0xff] }
  0x22   : > { %1589 = vmatpush1.bf16.msra.mxu1 %v1588_v20  ;;  %v381_v61 = vld [vmem:[%s2829_s1 + $0x2b0] sm:$0xff]  ;;  %v390_v0 = vld [vmem:[%s2829_s1 + $0x2f8] sm:$0xff]  ;;  %v379_v3 = vld [vmem:[%s2829_s1 + $0x2a0] sm:$0xff] }
  0x23   : > { %1591 = vmatprep.subr.bf16.mxu1 %v1590_v23  ;;  %1525 = vmatpush1.bf16.msra.mxu0 %v1524_v26  ;;  %v1604_v4 = vpack.c.bf16 %v381_v61, %v377_v60  ;;  %v384_v5 = vld [vmem:[%s2829_s1 + $0x2c8] sm:$0xff]  ;;  %v1606_v7 = vpack.c.bf16 %v390_v0, %v386_v63  ;;  %v385_v8 = vld [vmem:[%s2829_s1 + $0x2d0] sm:$0xff]  ;;  %v1540_v11 = vpack.c.bf16 %v379_v3, %v375_v2  ;;  %v394_v12 = vld [vmem:[%s2829_s1 + $0x318] sm:$0xff] }
  0x24   : > { %1527 = vmatprep.subr.bf16.mxu0 %v1526_v29  ;;  %v388_v6 = vld [vmem:[%s2829_s1 + $0x2e8] sm:$0xff]  ;;  %v389_v9 = vld [vmem:[%s2829_s1 + $0x2f0] sm:$0xff]  ;;  %v398_v13 = vld [vmem:[%s2829_s1 + $0x338] sm:$0xff] }
  0x25   : > { %v232_v10 = vld [vmem:[%s2282_s15 + $0x8] sm:$0xff]  ;;  %v1542_v14 = vpack.c.bf16 %v388_v6, %v384_v5  ;;  %v383_v15 = vld [vmem:[%s2829_s1 + $0x2c0] sm:$0xff]  ;;  %v1608_v17 = vpack.c.bf16 %v389_v9, %v385_v8  ;;  %v1610_v20 = vpack.c.bf16 %v398_v13, %v394_v12  ;;  %v393_v21 = vld [vmem:[%s2829_s1 + $0x310] sm:$0xff] }
  0x26   : > { %1593 = vmatpush1.bf16.msra.mxu1 %v1592_v32  ;;  %766 = vmatprep.mubr.f32.mxu1 %v232_v10  ;;  %v387_v16 = vld [vmem:[%s2829_s1 + $0x2e0] sm:$0xff]  ;;  %v392_v18 = vld [vmem:[%s2829_s1 + $0x308] sm:$0xff]  ;;  %v397_v22 = vld [vmem:[%s2829_s1 + $0x330] sm:$0xff] }
  0x27   : > { %1595 = vmatprep.subr.bf16.mxu1 %v1594_v35  ;;  %1529 = vmatpush1.bf16.msra.mxu0 %v1528_v38  ;;  %v396_v19 = vld [vmem:[%s2829_s1 + $0x328] sm:$0xff]  ;;  %v1544_v23 = vpack.c.bf16 %v387_v16, %v383_v15  ;;  %v402_v24 = vld [vmem:[%s2829_s1 + $0x358] sm:$0xff]  ;;  %v391_v27 = vld [vmem:[%s2829_s1 + $0x300] sm:$0xff]  ;;  %v1612_v29 = vpack.c.bf16 %v397_v22, %v393_v21 }
  0x28   : > { %1531 = vmatprep.subr.bf16.mxu0 %v1530_v41  ;;  %509 = vmatprep.mubr.f32.mxu0 %v232_v10  ;;  %v406_v25 = vld [vmem:[%s2829_s1 + $0x378] sm:$0xff]  ;;  %v1546_v26 = vpack.c.bf16 %v396_v19, %v392_v18  ;;  %v395_v28 = vld [vmem:[%s2829_s1 + $0x320] sm:$0xff]  ;;  %v400_v30 = vld [vmem:[%s2829_s1 + $0x348] sm:$0xff] }
  0x29   : > { %v404_v31 = vld [vmem:[%s2829_s1 + $0x368] sm:$0xff]  ;;  %v1614_v32 = vpack.c.bf16 %v406_v25, %v402_v24  ;;  %v401_v33 = vld [vmem:[%s2829_s1 + $0x350] sm:$0xff]  ;;  %v1548_v35 = vpack.c.bf16 %v395_v28, %v391_v27  ;;  %v410_v36 = vld [vmem:[%s2829_s1 + $0x398] sm:$0xff] }
  0x2a   : > { %1597 = vmatpush1.bf16.msra.mxu1 %v1596_v44  ;;  %v405_v34 = vld [vmem:[%s2829_s1 + $0x370] sm:$0xff]  ;;  %v414_v37 = vld [vmem:[%s2829_s1 + $0x3b8] sm:$0xff]  ;;  %v1550_v38 = vpack.c.bf16 %v404_v31, %v400_v30  ;;  %v399_v39 = vld [vmem:[%s2829_s1 + $0x340] sm:$0xff] }
  0x2b   : > { %1599 = vmatprep.subr.bf16.mxu1 %v1598_v47  ;;  %1533 = vmatpush1.bf16.msra.mxu0 %v1532_v50  ;;  %v403_v40 = vld [vmem:[%s2829_s1 + $0x360] sm:$0xff]  ;;  %v1616_v41 = vpack.c.bf16 %v405_v34, %v401_v33  ;;  %v408_v42 = vld [vmem:[%s2829_s1 + $0x388] sm:$0xff]  ;;  %v1618_v44 = vpack.c.bf16 %v414_v37, %v410_v36  ;;  %v409_v45 = vld [vmem:[%s2829_s1 + $0x390] sm:$0xff] }
  0x2c   : > { %1535 = vmatprep.subr.bf16.mxu0 %v1534_v53  ;;  %v412_v43 = vld [vmem:[%s2829_s1 + $0x3a8] sm:$0xff]  ;;  %v413_v46 = vld [vmem:[%s2829_s1 + $0x3b0] sm:$0xff]  ;;  %v1552_v47 = vpack.c.bf16 %v403_v40, %v399_v39  ;;  %v418_v48 = vld [vmem:[%s2829_s1 + $0x3d8] sm:$0xff] }
  0x2d   : > { %v422_v49 = vld [vmem:[%s2829_s1 + $0x3f8] sm:$0xff]  ;;  %v1554_v50 = vpack.c.bf16 %v412_v43, %v408_v42  ;;  %v407_v51 = vld [vmem:[%s2829_s1 + $0x380] sm:$0xff]  ;;  %v1620_v53 = vpack.c.bf16 %v413_v46, %v409_v45  ;;  %v416_v54 = vld [vmem:[%s2829_s1 + $0x3c8] sm:$0xff] }
  0x2e   : > { %1601 = vmatpush1.bf16.msra.mxu1 %v1600_v56  ;;  %v411_v52 = vld [vmem:[%s2829_s1 + $0x3a0] sm:$0xff]  ;;  %v420_v55 = vld [vmem:[%s2829_s1 + $0x3e8] sm:$0xff]  ;;  %v1622_v56 = vpack.c.bf16 %v422_v49, %v418_v48  ;;  %v417_v57 = vld [vmem:[%s2829_s1 + $0x3d0] sm:$0xff] }
  0x2f   : > { %1603 = vmatprep.subr.bf16.mxu1 %v1602_v59  ;;  %1537 = vmatpush1.bf16.msra.mxu0 %v1536_v62  ;;  %v421_v58 = vld [vmem:[%s2829_s1 + $0x3f0] sm:$0xff]  ;;  %v1556_v59 = vpack.c.bf16 %v411_v52, %v407_v51  ;;  %v1558_v60 = vpack.c.bf16 %v420_v55, %v416_v54  ;;  %v415_v61 = vld [vmem:[%s2829_s1 + $0x3c0] sm:$0xff]  ;;  %v234_v2 = vld [vmem:[%s2282_s15 + $0x18] sm:$0xff] }
  0x30   : > { %1539 = vmatprep.subr.bf16.mxu0 %v1538_v1  ;;  %v419_v62 = vld [vmem:[%s2829_s1 + $0x3e0] sm:$0xff]  ;;  %v1624_v63 = vpack.c.bf16 %v421_v58, %v417_v57  ;;  %v233_v3 = vld [vmem:[%s2282_s15 + $0x10] sm:$0xff]  ;;  %v238_v6 = vld [vmem:[%s2282_s15 + $0x38] sm:$0xff] }
  0x31   : > { %v1560_v0 = vpack.c.bf16 %v419_v62, %v415_v61  ;;  %v231_v1 = vld [vmem:[%s2282_s15] sm:$0xff]  ;;  %v240_v8 = vld [vmem:[%s2282_s15 + $0x48] sm:$0xff]  ;;  %v242_v10 = vld [vmem:[%s2282_s15 + $0x58] sm:$0xff] }
  0x32   : > { %1605 = vmatpush1.bf16.msra.mxu1 %v1604_v4  ;;  %v236_v4 = vld [vmem:[%s2282_s15 + $0x28] sm:$0xff]  ;;  %v235_v5 = vld [vmem:[%s2282_s15 + $0x20] sm:$0xff]  ;;  %v245_v15 = vld [vmem:[%s2282_s15 + $0x70] sm:$0xff] }
  0x33   : > { %1607 = vmatprep.subr.bf16.mxu1 %v1606_v7  ;;  %1541 = vmatpush1.bf16.msra.mxu0 %v1540_v11  ;;  %v237_v7 = vld [vmem:[%s2282_s15 + $0x30] sm:$0xff]  ;;  %v239_v9 = vld [vmem:[%s2282_s15 + $0x40] sm:$0xff]  ;;  %v244_v12 = vld [vmem:[%s2282_s15 + $0x68] sm:$0xff] }
  0x34   : > { %1543 = vmatprep.subr.bf16.mxu0 %v1542_v14  ;;  %v241_v11 = vld [vmem:[%s2282_s15 + $0x50] sm:$0xff]  ;;  %v243_v13 = vld [vmem:[%s2282_s15 + $0x60] sm:$0xff]  ;;  %v246_v14 = vld [vmem:[%s2282_s15 + $0x78] sm:$0xff] }
  0x35   : > { %v248_v16 = vld [vmem:[%s2282_s15 + $0x88] sm:$0xff]  ;;  %v250_v18 = vld [vmem:[%s2282_s15 + $0x98] sm:$0xff]  ;;  %v249_v19 = vld [vmem:[%s2282_s15 + $0x90] sm:$0xff] }
  0x36   : > { %1609 = vmatpush1.bf16.msra.mxu1 %v1608_v17  ;;  %v247_v17 = vld [vmem:[%s2282_s15 + $0x80] sm:$0xff]  ;;  %v254_v22 = vld [vmem:[%s2282_s15 + $0xb8] sm:$0xff]  ;;  %v256_v24 = vld [vmem:[%s2282_s15 + $0xc8] sm:$0xff] }
  0x37   : > { %1611 = vmatprep.subr.bf16.mxu1 %v1610_v20  ;;  %1545 = vmatpush1.bf16.msra.mxu0 %v1544_v23  ;;  %v252_v20 = vld [vmem:[%s2282_s15 + $0xa8] sm:$0xff]  ;;  %v251_v21 = vld [vmem:[%s2282_s15 + $0xa0] sm:$0xff]  ;;  %v253_v23 = vld [vmem:[%s2282_s15 + $0xb0] sm:$0xff] }
  0x38   : > { %1547 = vmatprep.subr.bf16.mxu0 %v1546_v26  ;;  %v255_v25 = vld [vmem:[%s2282_s15 + $0xc0] sm:$0xff]  ;;  %v258_v26 = vld [vmem:[%s2282_s15 + $0xd8] sm:$0xff]  ;;  %v257_v27 = vld [vmem:[%s2282_s15 + $0xd0] sm:$0xff] }
  0x39   : > { %v260_v28 = vld [vmem:[%s2282_s15 + $0xe8] sm:$0xff]  ;;  %v262_v30 = vld [vmem:[%s2282_s15 + $0xf8] sm:$0xff]  ;;  %v261_v31 = vld [vmem:[%s2282_s15 + $0xf0] sm:$0xff] }
  0x3a   : > { %1613 = vmatpush1.bf16.msra.mxu1 %v1612_v29  ;;  %v259_v29 = vld [vmem:[%s2282_s15 + $0xe0] sm:$0xff]  ;;  %v266_v34 = vld [vmem:[%s2282_s15 + $0x118] sm:$0xff]  ;;  %v268_v36 = vld [vmem:[%s2282_s15 + $0x128] sm:$0xff] }
  0x3b   : > { %1615 = vmatprep.subr.bf16.mxu1 %v1614_v32  ;;  %1549 = vmatpush1.bf16.msra.mxu0 %v1548_v35  ;;  %v264_v32 = vld [vmem:[%s2282_s15 + $0x108] sm:$0xff]  ;;  %v263_v33 = vld [vmem:[%s2282_s15 + $0x100] sm:$0xff]  ;;  %v265_v35 = vld [vmem:[%s2282_s15 + $0x110] sm:$0xff] }
  0x3c   : > { %1551 = vmatprep.subr.bf16.mxu0 %v1550_v38  ;;  %v267_v37 = vld [vmem:[%s2282_s15 + $0x120] sm:$0xff]  ;;  %v270_v38 = vld [vmem:[%s2282_s15 + $0x138] sm:$0xff]  ;;  %v269_v39 = vld [vmem:[%s2282_s15 + $0x130] sm:$0xff] }
  0x3d   : > { %v272_v40 = vld [vmem:[%s2282_s15 + $0x148] sm:$0xff]  ;;  %v274_v42 = vld [vmem:[%s2282_s15 + $0x158] sm:$0xff]  ;;  %v273_v43 = vld [vmem:[%s2282_s15 + $0x150] sm:$0xff] }
  0x3e   : > { %1617 = vmatpush1.bf16.msra.mxu1 %v1616_v41  ;;  %v271_v41 = vld [vmem:[%s2282_s15 + $0x140] sm:$0xff]  ;;  %v278_v46 = vld [vmem:[%s2282_s15 + $0x178] sm:$0xff]  ;;  %v280_v48 = vld [vmem:[%s2282_s15 + $0x188] sm:$0xff] }
  0x3f   : > { %1619 = vmatprep.subr.bf16.mxu1 %v1618_v44  ;;  %1553 = vmatpush1.bf16.msra.mxu0 %v1552_v47  ;;  %v276_v44 = vld [vmem:[%s2282_s15 + $0x168] sm:$0xff]  ;;  %v275_v45 = vld [vmem:[%s2282_s15 + $0x160] sm:$0xff]  ;;  %v277_v47 = vld [vmem:[%s2282_s15 + $0x170] sm:$0xff] }
  0x40   : > { %1555 = vmatprep.subr.bf16.mxu0 %v1554_v50  ;;  %v279_v49 = vld [vmem:[%s2282_s15 + $0x180] sm:$0xff]  ;;  %v282_v50 = vld [vmem:[%s2282_s15 + $0x198] sm:$0xff]  ;;  %v281_v51 = vld [vmem:[%s2282_s15 + $0x190] sm:$0xff] }
  0x41   : > { %v284_v52 = vld [vmem:[%s2282_s15 + $0x1a8] sm:$0xff]  ;;  %v286_v54 = vld [vmem:[%s2282_s15 + $0x1b8] sm:$0xff]  ;;  %v285_v55 = vld [vmem:[%s2282_s15 + $0x1b0] sm:$0xff] }
  0x42   : > { %1621 = vmatpush1.bf16.msra.mxu1 %v1620_v53  ;;  %v283_v53 = vld [vmem:[%s2282_s15 + $0x1a0] sm:$0xff]  ;;  %v290_v58 = vld [vmem:[%s2282_s15 + $0x1d8] sm:$0xff] }
  0x43   : > { %1623 = vmatprep.subr.bf16.mxu1 %v1622_v56  ;;  %1557 = vmatpush1.bf16.msra.mxu0 %v1556_v59  ;;  %v288_v56 = vld [vmem:[%s2282_s15 + $0x1c8] sm:$0xff]  ;;  %v287_v57 = vld [vmem:[%s2282_s15 + $0x1c0] sm:$0xff]  ;;  %v289_v59 = vld [vmem:[%s2282_s15 + $0x1d0] sm:$0xff] }
  0x44   : > { %1559 = vmatprep.subr.bf16.mxu0 %v1558_v60  ;;  %v292_v60 = vld [vmem:[%s2282_s15 + $0x1e8] sm:$0xff]  ;;  %v291_v61 = vld [vmem:[%s2282_s15 + $0x1e0] sm:$0xff]  ;;  %v294_v62 = vld [vmem:[%s2282_s15 + $0x1f8] sm:$0xff] }
  0x46   : > { %1625 = vmatpush1.bf16.msra.mxu1 %v1624_v63  ;;  %v293_v63 = vld [vmem:[%s2282_s15 + $0x1f0] sm:$0xff] }
  0x47   : > { %1561 = vmatpush1.bf16.msra.mxu0 %v1560_v0  ;;  %v425_v0 = vlaneseq }
  0x49   : > { %767 = vmatmul.mubr.f32.vlgmr.msra.gmra.mrb[0].mxu1 %v231_v1 }
  0x4a   : > { %772 = vmatprep.mubr.f32.mxu1 %v234_v2  ;;  %510 = vmatmul.mubr.f32.vlgmr.msra.gmra.mrb[0].mxu0 %v231_v1  ;;  %v426_v1 = vshrl.u32 %v425_v0, 7 }
  0x4b   : > { %515 = vmatprep.mubr.f32.mxu0 %v234_v2 }
  0x4c   : > { %v435_v2 = vsub.s32 2, %v426_v1 }
  0x4d   : > { %773 = vmatmul.mubr.f32.gmra.mrb[2].mxu1 %v233_v3 }
  0x4e   : > { %778 = vmatprep.mubr.f32.mxu1 %v236_v4  ;;  %516 = vmatmul.mubr.f32.gmra.mrb[2].mxu0 %v233_v3  ;;  %v423_v3 = vld [vmem:[%s2830_s2] sm:$0xf] }
  0x4f   : > { %521 = vmatprep.mubr.f32.mxu0 %v236_v4  ;;  %v439_v4 = vsub.s32 3, %v426_v1 }
  0x51   : > { %779 = vmatmul.mubr.f32.gmra.mrb[4].mxu1 %v235_v5 }
  0x52   : > { %784 = vmatprep.mubr.f32.mxu1 %v238_v6  ;;  %522 = vmatmul.mubr.f32.gmra.mrb[4].mxu0 %v235_v5  ;;  %v427_v5 = vsub.s32 0, %v426_v1 }
  0x53   : > { %527 = vmatprep.mubr.f32.mxu0 %v238_v6  ;;  %v431_v6 = vsub.s32 1, %v426_v1 }
  0x55   : > { %785 = vmatmul.mubr.f32.gmra.mrb[6].mxu1 %v237_v7 }
  0x56   : > { %790 = vmatprep.mubr.f32.mxu1 %v240_v8  ;;  %528 = vmatmul.mubr.f32.gmra.mrb[6].mxu0 %v237_v7  ;;  %v2471_v7 = vrot.slane %v423_v3, %v435_v2 }
  0x57   : > { %533 = vmatprep.mubr.f32.mxu0 %v240_v8  ;;  %v2473_v8 = vrot.slane %v423_v3, %v439_v4 }
  0x59   : > { %791 = vmatmul.mubr.f32.gmra.mrb[8].mxu1 %v239_v9 }
  0x5a   : > { %796 = vmatprep.mubr.f32.mxu1 %v242_v10  ;;  %534 = vmatmul.mubr.f32.gmra.mrb[8].mxu0 %v239_v9  ;;  %v2475_v9 = vrot.slane %v423_v3, %v427_v5 }
  0x5b   : > { %539 = vmatprep.mubr.f32.mxu0 %v242_v10 }
  0x5d   : > { %797 = vmatmul.mubr.f32.gmra.mrb[10].mxu1 %v241_v11 }
  0x5e   : > { %802 = vmatprep.mubr.f32.mxu1 %v244_v12  ;;  %540 = vmatmul.mubr.f32.gmra.mrb[10].mxu0 %v241_v11  ;;  %v2477_v11 = vrot.slane %v423_v3, %v431_v6 }
  0x5f   : > { %545 = vmatprep.mubr.f32.mxu0 %v244_v12 }
  0x61   : > { %803 = vmatmul.mubr.f32.gmra.mrb[12].mxu1 %v243_v13 }
  0x62   : > { %808 = vmatprep.mubr.f32.mxu1 %v246_v14  ;;  %546 = vmatmul.mubr.f32.gmra.mrb[12].mxu0 %v243_v13 }
  0x63   : > { %551 = vmatprep.mubr.f32.mxu0 %v246_v14 }
  0x65   : > { %809 = vmatmul.mubr.f32.gmra.mrb[14].mxu1 %v245_v15 }
  0x66   : > { %814 = vmatprep.mubr.f32.mxu1 %v248_v16  ;;  %552 = vmatmul.mubr.f32.gmra.mrb[14].mxu0 %v245_v15 }
  0x67   : > { %557 = vmatprep.mubr.f32.mxu0 %v248_v16 }
  0x69   : > { %815 = vmatmul.mubr.f32.gmra.mrb[16].mxu1 %v247_v17 }
  0x6a   : > { %820 = vmatprep.mubr.f32.mxu1 %v250_v18  ;;  %558 = vmatmul.mubr.f32.gmra.mrb[16].mxu0 %v247_v17 }
  0x6b   : > { %563 = vmatprep.mubr.f32.mxu0 %v250_v18 }
  0x6d   : > { %821 = vmatmul.mubr.f32.gmra.mrb[18].mxu1 %v249_v19 }
  0x6e   : > { %826 = vmatprep.mubr.f32.mxu1 %v252_v20  ;;  %564 = vmatmul.mubr.f32.gmra.mrb[18].mxu0 %v249_v19 }
  0x6f   : > { %569 = vmatprep.mubr.f32.mxu0 %v252_v20 }
  0x71   : > { %827 = vmatmul.mubr.f32.gmra.mrb[20].mxu1 %v251_v21 }
  0x72   : > { %832 = vmatprep.mubr.f32.mxu1 %v254_v22  ;;  %570 = vmatmul.mubr.f32.gmra.mrb[20].mxu0 %v251_v21 }
  0x73   : > { %575 = vmatprep.mubr.f32.mxu0 %v254_v22 }
  0x75   : > { %833 = vmatmul.mubr.f32.gmra.mrb[22].mxu1 %v253_v23 }
  0x76   : > { %838 = vmatprep.mubr.f32.mxu1 %v256_v24  ;;  %576 = vmatmul.mubr.f32.gmra.mrb[22].mxu0 %v253_v23 }
  0x77   : > { %581 = vmatprep.mubr.f32.mxu0 %v256_v24 }
  0x79   : > { %839 = vmatmul.mubr.f32.gmra.mrb[24].mxu1 %v255_v25 }
  0x7a   : > { %844 = vmatprep.mubr.f32.mxu1 %v258_v26  ;;  %582 = vmatmul.mubr.f32.gmra.mrb[24].mxu0 %v255_v25 }
  0x7b   : > { %587 = vmatprep.mubr.f32.mxu0 %v258_v26 }
  0x7d   : > { %845 = vmatmul.mubr.f32.gmra.mrb[26].mxu1 %v257_v27 }
  0x7e   : > { %850 = vmatprep.mubr.f32.mxu1 %v260_v28  ;;  %588 = vmatmul.mubr.f32.gmra.mrb[26].mxu0 %v257_v27 }
  0x7f   : > { %593 = vmatprep.mubr.f32.mxu0 %v260_v28 }
  0x81   : > { %851 = vmatmul.mubr.f32.gmra.mrb[28].mxu1 %v259_v29 }
  0x82   : > { %856 = vmatprep.mubr.f32.mxu1 %v262_v30  ;;  %594 = vmatmul.mubr.f32.gmra.mrb[28].mxu0 %v259_v29 }
  0x83   : > { %599 = vmatprep.mubr.f32.mxu0 %v262_v30 }
  0x85   : > { %857 = vmatmul.mubr.f32.gmra.mrb[30].mxu1 %v261_v31 }
  0x86   : > { %862 = vmatprep.mubr.f32.mxu1 %v264_v32  ;;  %600 = vmatmul.mubr.f32.gmra.mrb[30].mxu0 %v261_v31 }
  0x87   : > { %605 = vmatprep.mubr.f32.mxu0 %v264_v32 }
  0x89   : > { %863 = vmatmul.mubr.f32.gmra.mrb[32].mxu1 %v263_v33 }
  0x8a   : > { %868 = vmatprep.mubr.f32.mxu1 %v266_v34  ;;  %606 = vmatmul.mubr.f32.gmra.mrb[32].mxu0 %v263_v33 }
  0x8b   : > { %611 = vmatprep.mubr.f32.mxu0 %v266_v34 }
  0x8d   : > { %869 = vmatmul.mubr.f32.gmra.mrb[34].mxu1 %v265_v35 }
  0x8e   : > { %874 = vmatprep.mubr.f32.mxu1 %v268_v36  ;;  %612 = vmatmul.mubr.f32.gmra.mrb[34].mxu0 %v265_v35 }
  0x8f   : > { %617 = vmatprep.mubr.f32.mxu0 %v268_v36 }
  0x91   : > { %875 = vmatmul.mubr.f32.gmra.mrb[36].mxu1 %v267_v37 }
  0x92   : > { %880 = vmatprep.mubr.f32.mxu1 %v270_v38  ;;  %618 = vmatmul.mubr.f32.gmra.mrb[36].mxu0 %v267_v37 }
  0x93   : > { %623 = vmatprep.mubr.f32.mxu0 %v270_v38 }
  0x95   : > { %881 = vmatmul.mubr.f32.gmra.mrb[38].mxu1 %v269_v39 }
  0x96   : > { %886 = vmatprep.mubr.f32.mxu1 %v272_v40  ;;  %624 = vmatmul.mubr.f32.gmra.mrb[38].mxu0 %v269_v39 }
  0x97   : > { %629 = vmatprep.mubr.f32.mxu0 %v272_v40 }
  0x99   : > { %887 = vmatmul.mubr.f32.gmra.mrb[40].mxu1 %v271_v41 }
  0x9a   : > { %892 = vmatprep.mubr.f32.mxu1 %v274_v42  ;;  %630 = vmatmul.mubr.f32.gmra.mrb[40].mxu0 %v271_v41 }
  0x9b   : > { %635 = vmatprep.mubr.f32.mxu0 %v274_v42 }
  0x9d   : > { %893 = vmatmul.mubr.f32.gmra.mrb[42].mxu1 %v273_v43 }
  0x9e   : > { %898 = vmatprep.mubr.f32.mxu1 %v276_v44  ;;  %636 = vmatmul.mubr.f32.gmra.mrb[42].mxu0 %v273_v43 }
  0x9f   : > { %641 = vmatprep.mubr.f32.mxu0 %v276_v44 }
  0xa1   : > { %899 = vmatmul.mubr.f32.gmra.mrb[44].mxu1 %v275_v45 }
  0xa2   : > { %904 = vmatprep.mubr.f32.mxu1 %v278_v46  ;;  %642 = vmatmul.mubr.f32.gmra.mrb[44].mxu0 %v275_v45 }
  0xa3   : > { %647 = vmatprep.mubr.f32.mxu0 %v278_v46 }
  0xa5   : > { %905 = vmatmul.mubr.f32.gmra.mrb[46].mxu1 %v277_v47 }
  0xa6   : > { %910 = vmatprep.mubr.f32.mxu1 %v280_v48  ;;  %648 = vmatmul.mubr.f32.gmra.mrb[46].mxu0 %v277_v47 }
  0xa7   : > { %653 = vmatprep.mubr.f32.mxu0 %v280_v48 }
  0xa9   : > { %911 = vmatmul.mubr.f32.gmra.mrb[48].mxu1 %v279_v49 }
  0xaa   : > { %916 = vmatprep.mubr.f32.mxu1 %v282_v50  ;;  %654 = vmatmul.mubr.f32.gmra.mrb[48].mxu0 %v279_v49 }
  0xab   : > { %659 = vmatprep.mubr.f32.mxu0 %v282_v50 }
  0xad   : > { %917 = vmatmul.mubr.f32.gmra.mrb[50].mxu1 %v281_v51 }
  0xae   : > { %922 = vmatprep.mubr.f32.mxu1 %v284_v52  ;;  %660 = vmatmul.mubr.f32.gmra.mrb[50].mxu0 %v281_v51 }
  0xaf   : > { %665 = vmatprep.mubr.f32.mxu0 %v284_v52 }
  0xb1   : > { %923 = vmatmul.mubr.f32.gmra.mrb[52].mxu1 %v283_v53 }
  0xb2   : > { %928 = vmatprep.mubr.f32.mxu1 %v286_v54  ;;  %666 = vmatmul.mubr.f32.gmra.mrb[52].mxu0 %v283_v53 }
  0xb3   : > { %671 = vmatprep.mubr.f32.mxu0 %v286_v54 }
  0xb5   : > { %929 = vmatmul.mubr.f32.gmra.mrb[54].mxu1 %v285_v55 }
  0xb6   : > { %934 = vmatprep.mubr.f32.mxu1 %v288_v56  ;;  %672 = vmatmul.mubr.f32.gmra.mrb[54].mxu0 %v285_v55 }
  0xb7   : > { %677 = vmatprep.mubr.f32.mxu0 %v288_v56 }
  0xb9   : > { %935 = vmatmul.mubr.f32.gmra.mrb[56].mxu1 %v287_v57 }
  0xba   : > { %940 = vmatprep.mubr.f32.mxu1 %v290_v58  ;;  %678 = vmatmul.mubr.f32.gmra.mrb[56].mxu0 %v287_v57 }
  0xbb   : > { %683 = vmatprep.mubr.f32.mxu0 %v290_v58 }
  0xbd   : > { %941 = vmatmul.mubr.f32.gmra.mrb[58].mxu1 %v289_v59 }
  0xbe   : > { %946 = vmatprep.mubr.f32.mxu1 %v292_v60  ;;  %684 = vmatmul.mubr.f32.gmra.mrb[58].mxu0 %v289_v59 }
  0xbf   : > { %689 = vmatprep.mubr.f32.mxu0 %v292_v60 }
  0xc1   : > { %947 = vmatmul.mubr.f32.gmra.mrb[60].mxu1 %v291_v61 }
  0xc2   : > { %952 = vmatprep.mubr.f32.mxu1 %v294_v62  ;;  %690 = vmatmul.mubr.f32.gmra.mrb[60].mxu0 %v291_v61 }
  0xc3   : > { %695 = vmatprep.mubr.f32.mxu0 %v294_v62 }
  0xc5   : > { %953 = vmatmul.mubr.f32.gmra.mrb[62].mxu1 %v293_v63 }
  0xc6   : > { %696 = vmatmul.mubr.f32.gmra.mrb[62].mxu0 %v293_v63 }
 0x11c   : > { %v768_v10 = vpop.f32.mrb[0].mxu1 }
 0x11d   : > { %v769_v12 = vadd.f32 %v768_v10, %v2471_v7  ;;  %v770_v13 = vpop.f32.mrb[1].mxu1  ;;  %v511_v15 = vpop.f32.mrb[0].mxu0 }
 0x11e   : > { %v771_v14 = vadd.f32 %v770_v13, %v2473_v8  ;;  %v512_v17 = vadd.f32 %v511_v15, %v2475_v9  ;;  %v513_v18 = vpop.f32.mrb[1].mxu0 }
 0x11f   : > { %v1023_v16 = vmul.f32 0.5, %v769_v12  ;;  %v514_v21 = vadd.f32 %v513_v18, %v2477_v11 }
 0x120   : > { %v1024_v19 = vmul.f32 0.5, %v771_v14  ;;  %v774_v20 = vpop.f32.mrb[2].mxu1 }
 0x121   : > { %1701 = vtanh.f32 %v1023_v16  ;;  %v775_v22 = vadd.f32 %v774_v20, %v2471_v7  ;;  %v776_v23 = vpop.f32.mrb[3].mxu1  ;;  %v517_v25 = vpop.f32.mrb[2].mxu0 }
 0x122   : > { %1703 = vtanh.f32 %v1024_v19  ;;  %v777_v24 = vadd.f32 %v776_v23, %v2473_v8  ;;  %v518_v27 = vadd.f32 %v517_v25, %v2475_v9  ;;  %v519_v28 = vpop.f32.mrb[3].mxu0 }
 0x123   : > { %v1025_v26 = vmul.f32 0.5, %v775_v22  ;;  %1705 = vtanh.f32 %v512_v17  ;;  %v520_v31 = vadd.f32 %v519_v28, %v2477_v11 }
 0x124   : > { %v1026_v29 = vmul.f32 0.5, %v777_v24  ;;  %1707 = vtanh.f32 %v514_v21  ;;  %v780_v30 = vpop.f32.mrb[4].mxu1 }
 0x125   : > { %1709 = vtanh.f32 %v1025_v26  ;;  %v781_v32 = vadd.f32 %v780_v30, %v2471_v7  ;;  %v782_v33 = vpop.f32.mrb[5].mxu1  ;;  %v523_v35 = vpop.f32.mrb[4].mxu0 }
 0x126   : > { %1711 = vtanh.f32 %v1026_v29  ;;  %v783_v34 = vadd.f32 %v782_v33, %v2473_v8  ;;  %v524_v37 = vadd.f32 %v523_v35, %v2475_v9  ;;  %v525_v38 = vpop.f32.mrb[5].mxu0 }
 0x127   : > { %v1027_v36 = vmul.f32 0.5, %v781_v32  ;;  %1713 = vtanh.f32 %v518_v27  ;;  %v526_v41 = vadd.f32 %v525_v38, %v2477_v11 }
 0x128   : > { %v1028_v39 = vmul.f32 0.5, %v783_v34  ;;  %1715 = vtanh.f32 %v520_v31  ;;  %v786_v40 = vpop.f32.mrb[6].mxu1 }
 0x129   : > { %1717 = vtanh.f32 %v1027_v36  ;;  %v787_v42 = vadd.f32 %v786_v40, %v2471_v7  ;;  %v788_v43 = vpop.f32.mrb[7].mxu1  ;;  %v529_v45 = vpop.f32.mrb[6].mxu0 }
 0x12a   : > { %1719 = vtanh.f32 %v1028_v39  ;;  %v789_v44 = vadd.f32 %v788_v43, %v2473_v8  ;;  %v530_v48 = vadd.f32 %v529_v45, %v2475_v9  ;;  %v531_v49 = vpop.f32.mrb[7].mxu0 }
 0x12b   : > { %v1702_v46 = vpop.eup %1701  ;;  %v1029_v47 = vmul.f32 0.5, %v787_v42  ;;  %1721 = vtanh.f32 %v524_v37  ;;  %v532_v54 = vadd.f32 %v531_v49, %v2477_v11 }
 0x12c   : > { %v1704_v50 = vpop.eup %1703  ;;  %v1151_v51 = vadd.f32 1.0, %v1702_v46  ;;  %v1030_v52 = vmul.f32 0.5, %v789_v44  ;;  %1723 = vtanh.f32 %v526_v41  ;;  %v792_v53 = vpop.f32.mrb[8].mxu1 }
 0x12d   : > { %v1706_v55 = vpop.eup %1705  ;;  %v1152_v56 = vadd.f32 1.0, %v1704_v50  ;;  %1725 = vtanh.f32 %v1029_v47  ;;  %v793_v57 = vadd.f32 %v792_v53, %v2471_v7  ;;  %v794_v58 = vpop.f32.mrb[9].mxu1 }
 0x12e   : > { %v1708_v59 = vpop.eup %1707  ;;  %v1215_v60 = vmul.f32 0.5, %v1151_v51  ;;  %1727 = vtanh.f32 %v1030_v52  ;;  %v795_v61 = vadd.f32 %v794_v58, %v2473_v8  ;;  %v535_v62 = vpop.f32.mrb[8].mxu0 }
 0x12f   : > { %v1710_v63 = vpop.eup %1709  ;;  %v1216_v0 = vmul.f32 0.5, %v1152_v56  ;;  %v1031_v1 = vmul.f32 0.5, %v793_v57  ;;  %1729 = vtanh.f32 %v530_v48  ;;  %v536_v2 = vadd.f32 %v535_v62, %v2475_v9  ;;  %v537_v3 = vpop.f32.mrb[9].mxu0 }
 0x130   : > { %v1712_v4 = vpop.eup %1711  ;;  %v1153_v5 = vadd.f32 1.0, %v1710_v63  ;;  %v1032_v6 = vmul.f32 0.5, %v795_v61  ;;  %1731 = vtanh.f32 %v532_v54  ;;  %v798_v10 = vpop.f32.mrb[10].mxu1  ;;  %v538_v12 = vadd.f32 %v537_v3, %v2477_v11 }
 0x131   : > { %v1714_v13 = vpop.eup %1713  ;;  %v1154_v14 = vadd.f32 1.0, %v1712_v4  ;;  %1733 = vtanh.f32 %v1031_v1  ;;  %v799_v15 = vadd.f32 %v798_v10, %v2471_v7  ;;  %v800_v16 = vpop.f32.mrb[11].mxu1  ;;  %v1280_v17 = vmul.f32 %v1708_v59, %v1216_v0 }
 0x132   : > { %v1716_v18 = vpop.eup %1715  ;;  %v1217_v19 = vmul.f32 0.5, %v1153_v5  ;;  %1735 = vtanh.f32 %v1032_v6  ;;  %v801_v20 = vadd.f32 %v800_v16, %v2473_v8  ;;  %v541_v21 = vpop.f32.mrb[10].mxu0  ;;  %v1279_v22 = vmul.f32 %v1706_v55, %v1215_v60 }
 0x133   : > { %v1718_v23 = vpop.eup %1717  ;;  %v1218_v24 = vmul.f32 0.5, %v1154_v14  ;;  %v1033_v25 = vmul.f32 0.5, %v799_v15  ;;  %1737 = vtanh.f32 %v536_v2  ;;  %v542_v26 = vadd.f32 %v541_v21, %v2475_v9  ;;  %v543_v27 = vpop.f32.mrb[11].mxu0 }
 0x134   : > { %v1720_v28 = vpop.eup %1719  ;;  %v1155_v29 = vadd.f32 1.0, %v1718_v23  ;;  %v1034_v30 = vmul.f32 0.5, %v801_v20  ;;  %1739 = vtanh.f32 %v538_v12  ;;  %v804_v31 = vpop.f32.mrb[12].mxu1  ;;  %v544_v32 = vadd.f32 %v543_v27, %v2477_v11 }
 0x135   : > { %v2503_v33 = vpop.eup %1721  ;;  %v1156_v34 = vadd.f32 1.0, %v1720_v28  ;;  %1741 = vtanh.f32 %v1033_v25  ;;  %v805_v35 = vadd.f32 %v804_v31, %v2471_v7  ;;  %v806_v36 = vpop.f32.mrb[13].mxu1  ;;  %v1282_v37 = vmul.f32 %v1716_v18, %v1218_v24 }
 0x136   : > { %v1724_v38 = vpop.eup %1723  ;;  %v2506_v39 = vmul.f32 0.5, %v1155_v29  ;;  %1743 = vtanh.f32 %v1034_v30  ;;  %v807_v40 = vadd.f32 %v806_v36, %v2473_v8  ;;  %v547_v41 = vpop.f32.mrb[12].mxu0  ;;  %v1281_v42 = vmul.f32 %v1714_v13, %v1217_v19 }
 0x137   : > { %v1726_v43 = vpop.eup %1725  ;;  %v1220_v44 = vmul.f32 0.5, %v1156_v34  ;;  %v1035_v45 = vmul.f32 0.5, %v805_v35  ;;  %1745 = vtanh.f32 %v542_v26  ;;  %v548_v46 = vadd.f32 %v547_v41, %v2475_v9  ;;  %v549_v47 = vpop.f32.mrb[13].mxu0 }
 0x138   : > { %v1728_v48 = vpop.eup %1727  ;;  %v1157_v49 = vadd.f32 1.0, %v1726_v43  ;;  %v1036_v50 = vmul.f32 0.5, %v807_v40  ;;  %1747 = vtanh.f32 %v544_v32  ;;  %v810_v51 = vpop.f32.mrb[14].mxu1  ;;  %v1626_v52 = vpack.c.bf16 %v1282_v37, %v1280_v17 }
 0x139   : > { %v2510_v53 = vpop.eup %1729  ;;  %v1158_v54 = vadd.f32 1.0, %v1728_v48  ;;  %1749 = vtanh.f32 %v1035_v45  ;;  %v811_v55 = vadd.f32 %v810_v51, %v2471_v7  ;;  %v812_v56 = vpop.f32.mrb[15].mxu1  ;;  %v550_v57 = vadd.f32 %v549_v47, %v2477_v11 }
 0x13a   : > { %v1732_v58 = vpop.eup %1731  ;;  %v1221_v59 = vmul.f32 0.5, %v1157_v49  ;;  %1751 = vtanh.f32 %v1036_v50  ;;  %v813_v60 = vadd.f32 %v812_v56, %v2473_v8  ;;  %1627 = vmatprep.subr.bf16.mxu0 %v1626_v52  ;;  %v1628_v61 = vpack.c.bf16 %v1281_v42, %v1279_v22  ;;  %v553_v62 = vpop.f32.mrb[14].mxu0 }
 0x13b   : > { %v1734_v63 = vpop.eup %1733  ;;  %v1222_v0 = vmul.f32 0.5, %v1158_v54  ;;  %v1037_v1 = vmul.f32 0.5, %v811_v55  ;;  %1753 = vtanh.f32 %v548_v46  ;;  %v554_v2 = vadd.f32 %v553_v62, %v2475_v9  ;;  %v555_v3 = vpop.f32.mrb[15].mxu0 }
 0x13c   : > { %v1736_v4 = vpop.eup %1735  ;;  %v1159_v5 = vadd.f32 1.0, %v1734_v63  ;;  %v1038_v6 = vmul.f32 0.5, %v813_v60  ;;  %1755 = vtanh.f32 %v550_v57  ;;  %1629 = vmatpush1.bf16.xpose.msra.mxu0 %v1628_v61  ;;  %v816_v10 = vpop.f32.mrb[16].mxu1  ;;  %v556_v12 = vadd.f32 %v555_v3, %v2477_v11 }
 0x13d   : > { %v2517_v13 = vpop.eup %1737  ;;  %v1160_v14 = vadd.f32 1.0, %v1736_v4  ;;  %1757 = vtanh.f32 %v1037_v1  ;;  %v817_v15 = vadd.f32 %v816_v10, %v2471_v7  ;;  %v818_v16 = vpop.f32.mrb[17].mxu1  ;;  %v1284_v17 = vmul.f32 %v1724_v38, %v1220_v44 }
 0x13e   : > { %v2520_v18 = vpop.eup %1739  ;;  %v2522_v19 = vmul.f32 0.5, %v1159_v5  ;;  %1759 = vtanh.f32 %v1038_v6  ;;  %v819_v20 = vadd.f32 %v818_v16, %v2473_v8  ;;  %v559_v21 = vpop.f32.mrb[16].mxu0  ;;  %v1286_v22 = vmul.f32 %v1732_v58, %v1222_v0 }
 0x13f   : > { %v1742_v23 = vpop.eup %1741  ;;  %v1224_v24 = vmul.f32 0.5, %v1160_v14  ;;  %v1039_v25 = vmul.f32 0.5, %v817_v15  ;;  %1761 = vtanh.f32 %v554_v2  ;;  %v560_v26 = vadd.f32 %v559_v21, %v2475_v9  ;;  %v561_v27 = vpop.f32.mrb[17].mxu0 }
 0x140   : > { %v1744_v28 = vpop.eup %1743  ;;  %v1161_v29 = vadd.f32 1.0, %v1742_v23  ;;  %v1040_v30 = vmul.f32 0.5, %v819_v20  ;;  %1763 = vtanh.f32 %v556_v12  ;;  %v822_v31 = vpop.f32.mrb[18].mxu1  ;;  %v1630_v32 = vpack.c.bf16 %v1286_v22, %v1284_v17 }
 0x141   : > { %v2526_v34 = vpop.eup %1745  ;;  %v1162_v35 = vadd.f32 1.0, %v1744_v28  ;;  %1765 = vtanh.f32 %v1039_v25  ;;  %v823_v36 = vadd.f32 %v822_v31, %v2471_v7  ;;  %v824_v37 = vpop.f32.mrb[19].mxu1  ;;  %v562_v38 = vadd.f32 %v561_v27, %v2477_v11 }
 0x142   : > { %v1748_v40 = vpop.eup %1747  ;;  %v2530_v41 = vmul.f32 0.5, %v1161_v29  ;;  %1767 = vtanh.f32 %v1040_v30  ;;  %v825_v42 = vadd.f32 %v824_v37, %v2473_v8  ;;  %1631 = vmatprep.subr.bf16.mxu0 %v1630_v32  ;;  %v1283_v43 = vmul.f32 %v2503_v33, %v2506_v39  ;;  %v565_v44 = vpop.f32.mrb[18].mxu0 }
 0x143   : > { %v1750_v45 = vpop.eup %1749  ;;  %v1226_v46 = vmul.f32 0.5, %v1162_v35  ;;  %v1041_v47 = vmul.f32 0.5, %v823_v36  ;;  %1769 = vtanh.f32 %v560_v26  ;;  %v1285_v48 = vmul.f32 %v2510_v53, %v1221_v59  ;;  %v567_v49 = vpop.f32.mrb[19].mxu0 }
 0x144   : > { %v1752_v50 = vpop.eup %1751  ;;  %v1163_v51 = vadd.f32 1.0, %v1750_v45  ;;  %v1042_v52 = vmul.f32 0.5, %v825_v42  ;;  %1771 = vtanh.f32 %v562_v38  ;;  %v828_v54 = vpop.f32.mrb[20].mxu1  ;;  %v566_v55 = vadd.f32 %v565_v44, %v2475_v9 }
 0x145   : > { %v2537_v56 = vpop.eup %1753  ;;  %v1164_v57 = vadd.f32 1.0, %v1752_v50  ;;  %1773 = vtanh.f32 %v1041_v47  ;;  %v1632_v33 = vpack.c.bf16 %v1285_v48, %v1283_v43  ;;  %v829_v39 = vadd.f32 %v828_v54, %v2471_v7  ;;  %v830_v58 = vpop.f32.mrb[21].mxu1 }
 0x146   : > { %v2540_v60 = vpop.eup %1755  ;;  %v2542_v61 = vmul.f32 0.5, %v1163_v51  ;;  %1775 = vtanh.f32 %v1042_v52  ;;  %v831_v53 = vadd.f32 %v830_v58, %v2473_v8  ;;  %v568_v59 = vadd.f32 %v567_v49, %v2477_v11  ;;  %v571_v62 = vpop.f32.mrb[20].mxu0 }
 0x147   : > { %v1758_v63 = vpop.eup %1757  ;;  %v2546_v0 = vmul.f32 0.5, %v1164_v57  ;;  %1633 = vmatpush1.bf16.xpose.msra.mxu0 %v1632_v33  ;;  %v1043_v1 = vmul.f32 0.5, %v829_v39  ;;  %1777 = vtanh.f32 %v566_v55  ;;  %v572_v2 = vadd.f32 %v571_v62, %v2475_v9  ;;  %v573_v3 = vpop.f32.mrb[21].mxu0 }
 0x148   : > { %v1760_v4 = vpop.eup %1759  ;;  %v1165_v5 = vadd.f32 1.0, %v1758_v63  ;;  %v1044_v6 = vmul.f32 0.5, %v831_v53  ;;  %1779 = vtanh.f32 %v568_v59  ;;  %v834_v10 = vpop.f32.mrb[22].mxu1  ;;  %v1288_v12 = vmul.f32 %v2520_v18, %v1224_v24 }
 0x149   : > { %v2550_v14 = vpop.eup %1761  ;;  %v1166_v15 = vadd.f32 1.0, %v1760_v4  ;;  %1781 = vtanh.f32 %v1043_v1  ;;  %v835_v16 = vadd.f32 %v834_v10, %v2471_v7  ;;  %v836_v17 = vpop.f32.mrb[23].mxu1  ;;  %v1290_v20 = vmul.f32 %v1748_v40, %v1226_v46 }
 0x14a   : > { %v1764_v21 = vpop.eup %1763  ;;  %v2553_v22 = vmul.f32 0.5, %v1165_v5  ;;  %1783 = vtanh.f32 %v1044_v6  ;;  %v837_v23 = vadd.f32 %v836_v17, %v2473_v8  ;;  %v574_v25 = vadd.f32 %v573_v3, %v2477_v11  ;;  %v577_v26 = vpop.f32.mrb[22].mxu0 }
 0x14b   : > { %v1766_v27 = vpop.eup %1765  ;;  %v1230_v28 = vmul.f32 0.5, %v1166_v15  ;;  %v1045_v18 = vmul.f32 0.5, %v835_v16  ;;  %1785 = vtanh.f32 %v572_v2  ;;  %v1634_v24 = vpack.c.bf16 %v1290_v20, %v1288_v12  ;;  %v579_v29 = vpop.f32.mrb[23].mxu0 }
 0x14c   : > { %v1768_v30 = vpop.eup %1767  ;;  %v1167_v31 = vadd.f32 1.0, %v1766_v27  ;;  %v1046_v32 = vmul.f32 0.5, %v837_v23  ;;  %1787 = vtanh.f32 %v574_v25  ;;  %v1287_v35 = vmul.f32 %v2517_v13, %v2522_v19  ;;  %v840_v36 = vpop.f32.mrb[24].mxu1 }
 0x14d   : > { %v2559_v37 = vpop.eup %1769  ;;  %v1168_v38 = vadd.f32 1.0, %v1768_v30  ;;  %1789 = vtanh.f32 %v1045_v18  ;;  %1635 = vmatprep.subr.bf16.mxu0 %v1634_v24  ;;  %v1289_v40 = vmul.f32 %v2526_v34, %v2530_v41  ;;  %v841_v42 = vadd.f32 %v840_v36, %v2471_v7  ;;  %v842_v43 = vpop.f32.mrb[25].mxu1 }
 0x14e   : > { %v2564_v44 = vpop.eup %1771  ;;  %v2566_v45 = vmul.f32 0.5, %v1167_v31  ;;  %1791 = vtanh.f32 %v1046_v32  ;;  %v578_v46 = vadd.f32 %v577_v26, %v2475_v9  ;;  %v843_v13 = vadd.f32 %v842_v43, %v2473_v8  ;;  %v583_v19 = vpop.f32.mrb[24].mxu0 }
 0x14f   : > { %v1774_v47 = vpop.eup %1773  ;;  %v2570_v48 = vmul.f32 0.5, %v1168_v38  ;;  %v1636_v49 = vpack.c.bf16 %v1289_v40, %v1287_v35  ;;  %v1047_v50 = vmul.f32 0.5, %v841_v42  ;;  %v580_v34 = vadd.f32 %v579_v29, %v2477_v11  ;;  %v585_v41 = vpop.f32.mrb[25].mxu0 }
 0x150   : > { %v1776_v51 = vpop.eup %1775  ;;  %v1169_v52 = vadd.f32 1.0, %v1774_v47  ;;  %1793 = vtanh.f32 %v578_v46  ;;  %v1048_v54 = vmul.f32 0.5, %v843_v13  ;;  %v846_v55 = vpop.f32.mrb[26].mxu1  ;;  %v584_v57 = vadd.f32 %v583_v19, %v2475_v9 }
 0x151   : > { %v2574_v33 = vpop.eup %1777  ;;  %v1170_v39 = vadd.f32 1.0, %v1776_v51  ;;  %1637 = vmatpush1.bf16.xpose.msra.mxu0 %v1636_v49  ;;  %1795 = vtanh.f32 %v1047_v50  ;;  %v847_v58 = vadd.f32 %v846_v55, %v2471_v7  ;;  %v848_v53 = vpop.f32.mrb[27].mxu1  ;;  %v1292_v59 = vmul.f32 %v2540_v60, %v2546_v0 }
 0x152   : > { %v1780_v62 = vpop.eup %1779  ;;  %v2579_v63 = vmul.f32 0.5, %v1169_v52  ;;  %1797 = vtanh.f32 %v1048_v54  ;;  %v849_v1 = vadd.f32 %v848_v53, %v2473_v8  ;;  %v1294_v2 = vmul.f32 %v1764_v21, %v1230_v28  ;;  %v589_v3 = vpop.f32.mrb[26].mxu0 }
 0x153   : > { %v1782_v4 = vpop.eup %1781  ;;  %v1234_v5 = vmul.f32 0.5, %v1170_v39  ;;  %1799 = vtanh.f32 %v580_v34  ;;  %v1049_v6 = vmul.f32 0.5, %v847_v58  ;;  %v586_v10 = vadd.f32 %v585_v41, %v2477_v11  ;;  %v591_v12 = vpop.f32.mrb[27].mxu0 }
 0x154   : > { %v1784_v15 = vpop.eup %1783  ;;  %v1171_v16 = vadd.f32 1.0, %v1782_v4  ;;  %1801 = vtanh.f32 %v584_v57  ;;  %v1050_v17 = vmul.f32 0.5, %v849_v1  ;;  %v1638_v60 = vpack.c.bf16 %v1294_v2, %v1292_v59  ;;  %v852_v0 = vpop.f32.mrb[28].mxu1 }
 0x155   : > { %v2583_v20 = vpop.eup %1785  ;;  %v1172_v23 = vadd.f32 1.0, %v1784_v15  ;;  %1803 = vtanh.f32 %v1049_v6  ;;  %v1291_v21 = vmul.f32 %v2537_v56, %v2542_v61  ;;  %v1293_v25 = vmul.f32 %v2550_v14, %v2553_v22  ;;  %v854_v26 = vpop.f32.mrb[29].mxu1 }
 0x156   : > { %v2589_v27 = vpop.eup %1787  ;;  %v2591_v28 = vmul.f32 0.5, %v1171_v16  ;;  %1805 = vtanh.f32 %v1050_v17  ;;  %1639 = vmatprep.subr.bf16.mxu0 %v1638_v60  ;;  %v853_v18 = vadd.f32 %v852_v0, %v2471_v7  ;;  %v590_v24 = vadd.f32 %v589_v3, %v2475_v9  ;;  %v595_v29 = vpop.f32.mrb[28].mxu0 }
 0x157   : > { %v1790_v30 = vpop.eup %1789  ;;  %v2595_v31 = vmul.f32 0.5, %v1172_v23  ;;  %1807 = vtanh.f32 %v586_v10  ;;  %v1640_v56 = vpack.c.bf16 %v1293_v25, %v1291_v21  ;;  %v855_v61 = vadd.f32 %v854_v26, %v2473_v8  ;;  %v597_v14 = vpop.f32.mrb[29].mxu0 }
 0x158   : > { %v1792_v22 = vpop.eup %1791  ;;  %v1173_v32 = vadd.f32 1.0, %v1790_v30  ;;  %v1051_v35 = vmul.f32 0.5, %v853_v18  ;;  %1809 = vtanh.f32 %v590_v24  ;;  %v592_v36 = vadd.f32 %v591_v12, %v2477_v11  ;;  %v858_v38 = vpop.f32.mrb[30].mxu1 }
 0x159   : > { %v1174_v40 = vadd.f32 1.0, %v1792_v22  ;;  %1641 = vmatpush1.bf16.xpose.msra.mxu0 %v1640_v56  ;;  %v1052_v42 = vmul.f32 0.5, %v855_v61  ;;  %v859_v43 = vadd.f32 %v858_v38, %v2471_v7  ;;  %v596_v46 = vadd.f32 %v595_v29, %v2475_v9  ;;  %v860_v13 = vpop.f32.mrb[31].mxu1  ;;  %v601_v34 = vpop.f32.mrb[30].mxu0 }
 0x15a   : > { %v2601_v19 = vpop.eup %1793  ;;  %v2603_v47 = vmul.f32 0.5, %v1173_v32  ;;  %1811 = vtanh.f32 %v1051_v35  ;;  %v861_v49 = vadd.f32 %v860_v13, %v2473_v8  ;;  %v1296_v50 = vmul.f32 %v2564_v44, %v2570_v48  ;;  %v603_v55 = vpop.f32.mrb[31].mxu0 }
 0x15b   : > { %v1796_v41 = vpop.eup %1795  ;;  %v1238_v51 = vmul.f32 0.5, %v1174_v40  ;;  %1813 = vtanh.f32 %v1052_v42  ;;  %v1053_v52 = vmul.f32 0.5, %v859_v43  ;;  %v1298_v54 = vmul.f32 %v1780_v62, %v1234_v5 }
 0x15c   : > { %v1798_v57 = vpop.eup %1797  ;;  %v1175_v39 = vadd.f32 1.0, %v1796_v41  ;;  %1815 = vtanh.f32 %v592_v36  ;;  %v1054_v58 = vmul.f32 0.5, %v861_v49  ;;  %v598_v53 = vadd.f32 %v597_v14, %v2477_v11  ;;  %v864_v59 = vpop.f32.mrb[32].mxu1 }
 0x15d   : > { %v1800_v1 = vpop.eup %1799  ;;  %v1176_v2 = vadd.f32 1.0, %v1798_v57  ;;  %1817 = vtanh.f32 %v1053_v52  ;;  %v1642_v3 = vpack.c.bf16 %v1298_v54, %v1296_v50  ;;  %v1295_v44 = vmul.f32 %v2559_v37, %v2566_v45  ;;  %v866_v48 = vpop.f32.mrb[33].mxu1 }
 0x15e   : > { %v2611_v4 = vpop.eup %1801  ;;  %v2613_v6 = vmul.f32 0.5, %v1175_v39  ;;  %1819 = vtanh.f32 %v596_v46  ;;  %v1297_v62 = vmul.f32 %v2574_v33, %v2579_v63  ;;  %v865_v5 = vadd.f32 %v864_v59, %v2471_v7  ;;  %v607_v10 = vpop.f32.mrb[32].mxu0 }
 0x15f   : > { %v1804_v12 = vpop.eup %1803  ;;  %v2618_v15 = vmul.f32 0.5, %v1176_v2  ;;  %1821 = vtanh.f32 %v1054_v58  ;;  %1643 = vmatprep.subr.bf16.mxu0 %v1642_v3  ;;  %v602_v16 = vadd.f32 %v601_v34, %v2475_v9  ;;  %v867_v37 = vadd.f32 %v866_v48, %v2473_v8  ;;  %v609_v45 = vpop.f32.mrb[33].mxu0 }
 0x160   : > { %v1806_v17 = vpop.eup %1805  ;;  %v1177_v60 = vadd.f32 1.0, %v1804_v12  ;;  %1823 = vtanh.f32 %v598_v53  ;;  %v1644_v0 = vpack.c.bf16 %v1297_v62, %v1295_v44  ;;  %v1055_v23 = vmul.f32 0.5, %v865_v5  ;;  %v870_v21 = vpop.f32.mrb[34].mxu1 }
 0x161   : > { %v2622_v33 = vpop.eup %1807  ;;  %v1178_v63 = vadd.f32 1.0, %v1806_v17  ;;  %1825 = vtanh.f32 %v602_v16  ;;  %v1056_v25 = vmul.f32 0.5, %v867_v37  ;;  %v604_v26 = vadd.f32 %v603_v55, %v2477_v11  ;;  %v872_v18 = vpop.f32.mrb[35].mxu1 }
 0x162   : > { %v2625_v24 = vpop.eup %1809  ;;  %v2627_v29 = vmul.f32 0.5, %v1177_v60  ;;  %1645 = vmatpush1.bf16.xpose.msra.mxu0 %v1644_v0  ;;  %1827 = vtanh.f32 %v1055_v23  ;;  %v871_v30 = vadd.f32 %v870_v21, %v2471_v7  ;;  %v608_v56 = vadd.f32 %v607_v10, %v2475_v9  ;;  %v613_v61 = vpop.f32.mrb[34].mxu0 }
 0x163   : > { %v1242_v14 = vmul.f32 0.5, %v1178_v63  ;;  %1829 = vtanh.f32 %v1056_v25  ;;  %v873_v22 = vadd.f32 %v872_v18, %v2473_v8  ;;  %v1300_v32 = vmul.f32 %v2589_v27, %v2595_v31  ;;  %v615_v35 = vpop.f32.mrb[35].mxu0 }
 0x164   : > { %v1812_v36 = vpop.eup %1811  ;;  %1831 = vtanh.f32 %v604_v26  ;;  %v1057_v38 = vmul.f32 0.5, %v871_v30  ;;  %v1302_v40 = vmul.f32 %v1800_v1, %v1238_v51  ;;  %v610_v42 = vadd.f32 %v609_v45, %v2477_v11  ;;  %v876_v43 = vpop.f32.mrb[36].mxu1 }
 0x165   : > { %v1814_v46 = vpop.eup %1813  ;;  %v1179_v13 = vadd.f32 1.0, %v1812_v36  ;;  %1833 = vtanh.f32 %v608_v56  ;;  %v1058_v49 = vmul.f32 0.5, %v873_v22  ;;  %v1299_v50 = vmul.f32 %v2583_v20, %v2591_v28  ;;  %v878_v34 = vpop.f32.mrb[37].mxu1 }
 0x166   : > { %v1816_v41 = vpop.eup %1815  ;;  %v1180_v52 = vadd.f32 1.0, %v1814_v46  ;;  %1835 = vtanh.f32 %v1057_v38  ;;  %v1646_v27 = vpack.c.bf16 %v1302_v40, %v1300_v32  ;;  %v1301_v31 = vmul.f32 %v2601_v19, %v2603_v47  ;;  %v619_v54 = vpop.f32.mrb[36].mxu0 }
 0x167   : > { %v1818_v51 = vpop.eup %1817  ;;  %v2639_v55 = vmul.f32 0.5, %v1179_v13  ;;  %1837 = vtanh.f32 %v1058_v49  ;;  %v877_v57 = vadd.f32 %v876_v43, %v2471_v7  ;;  %v614_v39 = vadd.f32 %v613_v61, %v2475_v9  ;;  %v621_v58 = vpop.f32.mrb[37].mxu0 }
 0x168   : > { %v2643_v53 = vpop.eup %1819  ;;  %v2645_v20 = vmul.f32 0.5, %v1180_v52  ;;  %v1181_v28 = vadd.f32 1.0, %v1818_v51  ;;  %1647 = vmatprep.subr.bf16.mxu0 %v1646_v27  ;;  %1839 = vtanh.f32 %v610_v42  ;;  %v1648_v59 = vpack.c.bf16 %v1301_v31, %v1299_v50  ;;  %v882_v1 = vpop.f32.mrb[38].mxu1 }
 0x169   : > { %v1822_v19 = vpop.eup %1821  ;;  %v1059_v47 = vmul.f32 0.5, %v877_v57  ;;  %1841 = vtanh.f32 %v614_v39  ;;  %v879_v2 = vadd.f32 %v878_v34, %v2473_v8  ;;  %v616_v3 = vadd.f32 %v615_v35, %v2477_v11  ;;  %v884_v44 = vpop.f32.mrb[39].mxu1 }
 0x16a   : > { %v2649_v48 = vpop.eup %1823  ;;  %v2651_v62 = vmul.f32 0.5, %v1181_v28  ;;  %v1182_v5 = vadd.f32 1.0, %v1822_v19  ;;  %1649 = vmatpush1.bf16.xpose.msra.mxu0 %v1648_v59  ;;  %v883_v10 = vadd.f32 %v882_v1, %v2471_v7  ;;  %v620_v12 = vadd.f32 %v619_v54, %v2475_v9  ;;  %v625_v16 = vpop.f32.mrb[38].mxu0 }
 0x16b   : > { %v2655_v37 = vpop.eup %1825  ;;  %1843 = vtanh.f32 %v1059_v47  ;;  %v1060_v45 = vmul.f32 0.5, %v879_v2  ;;  %v885_v17 = vadd.f32 %v884_v44, %v2473_v8  ;;  %v1304_v60 = vmul.f32 %v2622_v33, %v2618_v15  ;;  %v627_v0 = vpop.f32.mrb[39].mxu0 }
 0x16c   : > { %v1828_v23 = vpop.eup %1827  ;;  %v1246_v21 = vmul.f32 0.5, %v1182_v5  ;;  %1845 = vtanh.f32 %v616_v3  ;;  %v1061_v63 = vmul.f32 0.5, %v883_v10  ;;  %v1306_v25 = vmul.f32 %v1816_v41, %v1242_v14  ;;  %v888_v26 = vpop.f32.mrb[40].mxu1 }
 0x16d   : > { %v1830_v18 = vpop.eup %1829  ;;  %v1183_v30 = vadd.f32 1.0, %v1828_v23  ;;  %1847 = vtanh.f32 %v1060_v45  ;;  %v1062_v56 = vmul.f32 0.5, %v885_v17  ;;  %v622_v61 = vadd.f32 %v621_v58, %v2477_v11  ;;  %v890_v22 = vpop.f32.mrb[41].mxu1 }
 0x16e   : > { %v1832_v32 = vpop.eup %1831  ;;  %v1184_v35 = vadd.f32 1.0, %v1830_v18  ;;  %1849 = vtanh.f32 %v1061_v63  ;;  %v1650_v36 = vpack.c.bf16 %v1306_v25, %v1304_v60  ;;  %v1303_v15 = vmul.f32 %v2611_v4, %v2613_v6  ;;  %v631_v33 = vpop.f32.mrb[40].mxu0 }
 0x16f   : > { %v2663_v38 = vpop.eup %1833  ;;  %v2665_v40 = vmul.f32 0.5, %v1183_v30  ;;  %1851 = vtanh.f32 %v620_v12  ;;  %v1305_v14 = vmul.f32 %v2625_v24, %v2627_v29  ;;  %v889_v42 = vadd.f32 %v888_v26, %v2471_v7  ;;  %v633_v43 = vpop.f32.mrb[41].mxu0 }
 0x170   : > { %v1836_v46 = vpop.eup %1835  ;;  %v2670_v13 = vmul.f32 0.5, %v1184_v35  ;;  %1853 = vtanh.f32 %v1062_v56  ;;  %1651 = vmatprep.subr.bf16.mxu0 %v1650_v36  ;;  %v626_v49 = vadd.f32 %v625_v16, %v2475_v9  ;;  %v891_v4 = vadd.f32 %v890_v22, %v2473_v8  ;;  %v894_v6 = vpop.f32.mrb[42].mxu1 }
 0x171   : > { %v1838_v50 = vpop.eup %1837  ;;  %v1185_v34 = vadd.f32 1.0, %v1836_v46  ;;  %1855 = vtanh.f32 %v622_v61  ;;  %v1652_v41 = vpack.c.bf16 %v1305_v14, %v1303_v15  ;;  %v1063_v52 = vmul.f32 0.5, %v889_v42  ;;  %v896_v27 = vpop.f32.mrb[43].mxu1 }
 0x172   : > { %v2674_v24 = vpop.eup %1839  ;;  %v1186_v29 = vadd.f32 1.0, %v1838_v50  ;;  %1857 = vtanh.f32 %v626_v49  ;;  %v1064_v31 = vmul.f32 0.5, %v891_v4  ;;  %v628_v54 = vadd.f32 %v627_v0, %v2477_v11  ;;  %v637_v51 = vpop.f32.mrb[42].mxu0 }
 0x173   : > { %v2677_v57 = vpop.eup %1841  ;;  %v2679_v39 = vmul.f32 0.5, %v1185_v34  ;;  %1653 = vmatpush1.bf16.xpose.msra.mxu0 %v1652_v41  ;;  %1859 = vtanh.f32 %v1063_v52  ;;  %v895_v58 = vadd.f32 %v894_v6, %v2471_v7  ;;  %v632_v28 = vadd.f32 %v631_v33, %v2475_v9  ;;  %v639_v59 = vpop.f32.mrb[43].mxu0 }
 0x174   : > { %v1250_v1 = vmul.f32 0.5, %v1186_v29  ;;  %1861 = vtanh.f32 %v1064_v31  ;;  %v897_v19 = vadd.f32 %v896_v27, %v2473_v8  ;;  %v1308_v47 = vmul.f32 %v2649_v48, %v2645_v20  ;;  %v900_v2 = vpop.f32.mrb[44].mxu1 }
 0x175   : > { %v1844_v3 = vpop.eup %1843  ;;  %1863 = vtanh.f32 %v628_v54  ;;  %v1065_v44 = vmul.f32 0.5, %v895_v58  ;;  %v1310_v5 = vmul.f32 %v1832_v32, %v1246_v21  ;;  %v634_v10 = vadd.f32 %v633_v43, %v2477_v11  ;;  %v902_v12 = vpop.f32.mrb[45].mxu1 }
 0x176   : > { %v1846_v16 = vpop.eup %1845  ;;  %v1187_v45 = vadd.f32 1.0, %v1844_v3  ;;  %1865 = vtanh.f32 %v632_v28  ;;  %v1066_v17 = vmul.f32 0.5, %v897_v19  ;;  %v1307_v60 = vmul.f32 %v2643_v53, %v2639_v55  ;;  %v643_v0 = vpop.f32.mrb[44].mxu0 }
 0x177   : > { %v1848_v23 = vpop.eup %1847  ;;  %1867 = vtanh.f32 %v1065_v44  ;;  %v1654_v63 = vpack.c.bf16 %v1310_v5, %v1308_v47  ;;  %v1309_v20 = vmul.f32 %v2655_v37, %v2651_v62  ;;  %v901_v48 = vadd.f32 %v900_v2, %v2471_v7  ;;  %v645_v21 = vpop.f32.mrb[45].mxu0 }
 0x178   : > { %v1850_v25 = vpop.eup %1849  ;;  %v2692_v26 = vmul.f32 0.5, %v1187_v45  ;;  %v1188_v18 = vadd.f32 1.0, %v1848_v23  ;;  %1869 = vtanh.f32 %v1066_v17  ;;  %v638_v30 = vadd.f32 %v637_v51, %v2475_v9  ;;  %v906_v56 = vpop.f32.mrb[46].mxu1 }
 0x179   : > { %v2695_v61 = vpop.eup %1851  ;;  %v1189_v55 = vadd.f32 1.0, %v1850_v25  ;;  %1655 = vmatprep.subr.bf16.mxu0 %v1654_v63  ;;  %1871 = vtanh.f32 %v634_v10  ;;  %v1656_v53 = vpack.c.bf16 %v1309_v20, %v1307_v60  ;;  %v1067_v22 = vmul.f32 0.5, %v901_v48  ;;  %v908_v32 = vpop.f32.mrb[47].mxu1 }
 0x17a   : > { %v1854_v62 = vpop.eup %1853  ;;  %v2697_v37 = vmul.f32 0.5, %v1188_v18  ;;  %1873 = vtanh.f32 %v638_v30  ;;  %v903_v35 = vadd.f32 %v902_v12, %v2473_v8  ;;  %v640_v36 = vadd.f32 %v639_v59, %v2477_v11  ;;  %v649_v15 = vpop.f32.mrb[46].mxu0 }
 0x17b   : > { %v2701_v33 = vpop.eup %1855  ;;  %v2703_v14 = vmul.f32 0.5, %v1189_v55  ;;  %v1190_v42 = vadd.f32 1.0, %v1854_v62  ;;  %1657 = vmatpush1.bf16.xpose.msra.mxu0 %v1656_v53  ;;  %1875 = vtanh.f32 %v1067_v22  ;;  %v907_v43 = vadd.f32 %v906_v56, %v2471_v7  ;;  %v651_v46 = vpop.f32.mrb[47].mxu0 }
 0x17c   : > { %v2706_v49 = vpop.eup %1857  ;;  %v1068_v4 = vmul.f32 0.5, %v903_v35  ;;  %1877 = vtanh.f32 %v640_v36  ;;  %v644_v6 = vadd.f32 %v643_v0, %v2475_v9  ;;  %v909_v50 = vadd.f32 %v908_v32, %v2473_v8  ;;  %v912_v34 = vpop.f32.mrb[48].mxu1 }
 0x17d   : > { %v1860_v41 = vpop.eup %1859  ;;  %v1254_v52 = vmul.f32 0.5, %v1190_v42  ;;  %v1069_v27 = vmul.f32 0.5, %v907_v43  ;;  %v1312_v29 = vmul.f32 %v2674_v24, %v2670_v13  ;;  %v1314_v31 = vmul.f32 %v1846_v16, %v1250_v1  ;;  %v914_v54 = vpop.f32.mrb[49].mxu1 }
 0x17e   : > { %v1862_v51 = vpop.eup %1861  ;;  %v1191_v58 = vadd.f32 1.0, %v1860_v41  ;;  %1879 = vtanh.f32 %v1068_v4  ;;  %v1070_v28 = vmul.f32 0.5, %v909_v50  ;;  %v646_v59 = vadd.f32 %v645_v21, %v2477_v11  ;;  %v655_v19 = vpop.f32.mrb[48].mxu0 }
 0x17f   : > { %v1864_v47 = vpop.eup %1863  ;;  %v1192_v2 = vadd.f32 1.0, %v1862_v51  ;;  %1881 = vtanh.f32 %v1069_v27  ;;  %v1658_v3 = vpack.c.bf16 %v1314_v31, %v1312_v29  ;;  %v1311_v44 = vmul.f32 %v2663_v38, %v2665_v40  ;;  %v657_v5 = vpop.f32.mrb[49].mxu0 }
 0x180   : > { %v2715_v10 = vpop.eup %1865  ;;  %v2717_v13 = vmul.f32 0.5, %v1191_v58  ;;  %1883 = vtanh.f32 %v644_v6  ;;  %v1313_v24 = vmul.f32 %v2677_v57, %v2679_v39  ;;  %v913_v1 = vadd.f32 %v912_v34, %v2471_v7  ;;  %v918_v12 = vpop.f32.mrb[50].mxu1 }
 0x181   : > { %v1868_v16 = vpop.eup %1867  ;;  %v2722_v45 = vmul.f32 0.5, %v1192_v2  ;;  %1885 = vtanh.f32 %v1070_v28  ;;  %1659 = vmatprep.subr.bf16.mxu0 %v1658_v3  ;;  %v650_v17 = vadd.f32 %v649_v15, %v2475_v9  ;;  %v915_v38 = vadd.f32 %v914_v54, %v2473_v8  ;;  %v920_v40 = vpop.f32.mrb[51].mxu1 }
 0x182   : > { %v1870_v60 = vpop.eup %1869  ;;  %v1193_v0 = vadd.f32 1.0, %v1868_v16  ;;  %1887 = vtanh.f32 %v646_v59  ;;  %v1660_v23 = vpack.c.bf16 %v1313_v24, %v1311_v44  ;;  %v1071_v63 = vmul.f32 0.5, %v913_v1  ;;  %v661_v20 = vpop.f32.mrb[50].mxu0 }
 0x183   : > { %v2726_v57 = vpop.eup %1871  ;;  %v1194_v39 = vadd.f32 1.0, %v1870_v60  ;;  %1889 = vtanh.f32 %v650_v17  ;;  %v1072_v48 = vmul.f32 0.5, %v915_v38  ;;  %v652_v21 = vadd.f32 %v651_v46, %v2477_v11  ;;  %v663_v25 = vpop.f32.mrb[51].mxu0 }
 0x184   : > { %v2729_v18 = vpop.eup %1873  ;;  %v2731_v30 = vmul.f32 0.5, %v1193_v0  ;;  %1661 = vmatpush1.bf16.xpose.msra.mxu0 %v1660_v23  ;;  %1891 = vtanh.f32 %v1071_v63  ;;  %v919_v56 = vadd.f32 %v918_v12, %v2471_v7  ;;  %v656_v55 = vadd.f32 %v655_v19, %v2475_v9  ;;  %v924_v53 = vpop.f32.mrb[52].mxu1 }
 0x185   : > { %v1876_v22 = vpop.eup %1875  ;;  %v1258_v32 = vmul.f32 0.5, %v1194_v39  ;;  %1893 = vtanh.f32 %v1072_v48  ;;  %v921_v62 = vadd.f32 %v920_v40, %v2473_v8  ;;  %v1316_v35 = vmul.f32 %v2701_v33, %v2697_v37  ;;  %v926_v36 = vpop.f32.mrb[53].mxu1 }
 0x186   : > { %v1878_v15 = vpop.eup %1877  ;;  %v1195_v42 = vadd.f32 1.0, %v1876_v22  ;;  %1895 = vtanh.f32 %v652_v21  ;;  %v1073_v43 = vmul.f32 0.5, %v919_v56  ;;  %v1318_v46 = vmul.f32 %v1864_v47, %v1254_v52  ;;  %v667_v4 = vpop.f32.mrb[52].mxu0 }
 0x187   : > { %1897 = vtanh.f32 %v656_v55  ;;  %v1074_v6 = vmul.f32 0.5, %v921_v62  ;;  %v658_v50 = vadd.f32 %v657_v5, %v2477_v11  ;;  %v1315_v34 = vmul.f32 %v2695_v61, %v2692_v26  ;;  %v669_v41 = vpop.f32.mrb[53].mxu0 }
 0x188   : > { %v1880_v27 = vpop.eup %1879  ;;  %v2741_v29 = vmul.f32 0.5, %v1195_v42  ;;  %1899 = vtanh.f32 %v1073_v43  ;;  %v1662_v37 = vpack.c.bf16 %v1318_v46, %v1316_v35  ;;  %v1317_v33 = vmul.f32 %v2706_v49, %v2703_v14  ;;  %v930_v31 = vpop.f32.mrb[54].mxu1 }
 0x189   : > { %v1882_v54 = vpop.eup %1881  ;;  %v1196_v52 = vadd.f32 1.0, %v1880_v27  ;;  %1901 = vtanh.f32 %v1074_v6  ;;  %v925_v51 = vadd.f32 %v924_v53, %v2471_v7  ;;  %v662_v58 = vadd.f32 %v661_v20, %v2475_v9  ;;  %v932_v28 = vpop.f32.mrb[55].mxu1 }
 0x18a   : > { %v2747_v59 = vpop.eup %1883  ;;  %v1197_v26 = vadd.f32 1.0, %v1882_v54  ;;  %1663 = vmatprep.subr.bf16.mxu0 %v1662_v37  ;;  %1903 = vtanh.f32 %v658_v50  ;;  %v1664_v61 = vpack.c.bf16 %v1317_v33, %v1315_v34  ;;  %v927_v19 = vadd.f32 %v926_v36, %v2473_v8  ;;  %v673_v47 = vpop.f32.mrb[54].mxu0 }
 0x18b   : > { %v1886_v2 = vpop.eup %1885  ;;  %v2750_v14 = vmul.f32 0.5, %v1196_v52  ;;  %v1075_v49 = vmul.f32 0.5, %v925_v51  ;;  %1905 = vtanh.f32 %v662_v58  ;;  %v664_v3 = vadd.f32 %v663_v25, %v2477_v11  ;;  %v675_v44 = vpop.f32.mrb[55].mxu0 }
 0x18c   : > { %v2753_v5 = vpop.eup %1887  ;;  %v2755_v24 = vmul.f32 0.5, %v1197_v26  ;;  %v1198_v1 = vadd.f32 1.0, %v1886_v2  ;;  %1665 = vmatpush1.bf16.xpose.msra.mxu0 %v1664_v61  ;;  %v1076_v12 = vmul.f32 0.5, %v927_v19  ;;  %v931_v16 = vadd.f32 %v930_v31, %v2471_v7  ;;  %v936_v17 = vpop.f32.mrb[56].mxu1 }
 0x18d   : > { %v2758_v38 = vpop.eup %1889  ;;  %1907 = vtanh.f32 %v1075_v49  ;;  %v668_v40 = vadd.f32 %v667_v4, %v2475_v9  ;;  %v933_v60 = vadd.f32 %v932_v28, %v2473_v8  ;;  %v1320_v0 = vmul.f32 %v2726_v57, %v2722_v45  ;;  %v938_v23 = vpop.f32.mrb[57].mxu1 }
 0x18e   : > { %v1892_v63 = vpop.eup %1891  ;;  %v1262_v20 = vmul.f32 0.5, %v1198_v1  ;;  %1909 = vtanh.f32 %v1076_v12  ;;  %v1077_v39 = vmul.f32 0.5, %v931_v16  ;;  %v1322_v48 = vmul.f32 %v1878_v15, %v1258_v32  ;;  %v679_v21 = vpop.f32.mrb[56].mxu0 }
 0x18f   : > { %v1894_v25 = vpop.eup %1893  ;;  %v1199_v56 = vadd.f32 1.0, %v1892_v63  ;;  %1911 = vtanh.f32 %v664_v3  ;;  %v1078_v55 = vmul.f32 0.5, %v933_v60  ;;  %v670_v53 = vadd.f32 %v669_v41, %v2477_v11  ;;  %v681_v22 = vpop.f32.mrb[57].mxu0 }
 0x190   : > { %v1896_v62 = vpop.eup %1895  ;;  %v1200_v35 = vadd.f32 1.0, %v1894_v25  ;;  %1913 = vtanh.f32 %v1077_v39  ;;  %v1666_v36 = vpack.c.bf16 %v1322_v48, %v1320_v0  ;;  %v1319_v45 = vmul.f32 %v2715_v10, %v2717_v13  ;;  %v942_v57 = vpop.f32.mrb[58].mxu1 }
 0x191   : > { %v2767_v42 = vpop.eup %1897  ;;  %v2769_v43 = vmul.f32 0.5, %v1199_v56  ;;  %1915 = vtanh.f32 %v668_v40  ;;  %v1321_v32 = vmul.f32 %v2729_v18, %v2731_v30  ;;  %v937_v15 = vadd.f32 %v936_v17, %v2471_v7  ;;  %v944_v46 = vpop.f32.mrb[59].mxu1 }
 0x192   : > { %v1900_v4 = vpop.eup %1899  ;;  %v2774_v6 = vmul.f32 0.5, %v1200_v35  ;;  %1917 = vtanh.f32 %v1078_v55  ;;  %1667 = vmatprep.subr.bf16.mxu0 %v1666_v36  ;;  %v674_v50 = vadd.f32 %v673_v47, %v2475_v9  ;;  %v939_v10 = vadd.f32 %v938_v23, %v2473_v8  ;;  %v685_v13 = vpop.f32.mrb[58].mxu0 }
 0x193   : > { %v1902_v34 = vpop.eup %1901  ;;  %v1201_v41 = vadd.f32 1.0, %v1900_v4  ;;  %1919 = vtanh.f32 %v670_v53  ;;  %v1668_v27 = vpack.c.bf16 %v1321_v32, %v1319_v45  ;;  %v1079_v37 = vmul.f32 0.5, %v937_v15  ;;  %v687_v33 = vpop.f32.mrb[59].mxu0 }
 0x194   : > { %v2778_v18 = vpop.eup %1903  ;;  %v1202_v30 = vadd.f32 1.0, %v1902_v34  ;;  %1921 = vtanh.f32 %v674_v50  ;;  %v1080_v31 = vmul.f32 0.5, %v939_v10  ;;  %v676_v54 = vadd.f32 %v675_v44, %v2477_v11  ;;  %v948_v52 = vpop.f32.mrb[60].mxu1 }
 0x195   : > { %v2781_v51 = vpop.eup %1905  ;;  %v2783_v58 = vmul.f32 0.5, %v1201_v41  ;;  %1669 = vmatpush1.bf16.xpose.msra.mxu0 %v1668_v27  ;;  %1923 = vtanh.f32 %v1079_v37  ;;  %v943_v28 = vadd.f32 %v942_v57, %v2471_v7  ;;  %v680_v26 = vadd.f32 %v679_v21, %v2475_v9  ;;  %v950_v61 = vpop.f32.mrb[61].mxu1 }
 0x196   : > { %v1266_v19 = vmul.f32 0.5, %v1202_v30  ;;  %1925 = vtanh.f32 %v1080_v31  ;;  %v945_v47 = vadd.f32 %v944_v46, %v2473_v8  ;;  %v1324_v2 = vmul.f32 %v2753_v5, %v2750_v14  ;;  %v691_v49 = vpop.f32.mrb[60].mxu0 }
 0x197   : > { %v1908_v3 = vpop.eup %1907  ;;  %1927 = vtanh.f32 %v676_v54  ;;  %v1081_v44 = vmul.f32 0.5, %v943_v28  ;;  %v1326_v1 = vmul.f32 %v1896_v62, %v1262_v20  ;;  %v682_v12 = vadd.f32 %v681_v22, %v2477_v11  ;;  %v693_v16 = vpop.f32.mrb[61].mxu0 }
 0x198   : > { %v1910_v17 = vpop.eup %1909  ;;  %v1203_v40 = vadd.f32 1.0, %v1908_v3  ;;  %1929 = vtanh.f32 %v680_v26  ;;  %v1082_v60 = vmul.f32 0.5, %v945_v47  ;;  %v1323_v0 = vmul.f32 %v2747_v59, %v2741_v29  ;;  %v954_v23 = vpop.f32.mrb[62].mxu1 }
 0x199   : > { %v1912_v63 = vpop.eup %1911  ;;  %v1204_v39 = vadd.f32 1.0, %v1910_v17  ;;  %1931 = vtanh.f32 %v1081_v44  ;;  %v1670_v14 = vpack.c.bf16 %v1326_v1, %v1324_v2  ;;  %v1325_v5 = vmul.f32 %v2758_v38, %v2755_v24  ;;  %v956_v48 = vpop.f32.mrb[63].mxu1 }
 0x19a   : > { %v1914_v20 = vpop.eup %1913  ;;  %v2795_v21 = vmul.f32 0.5, %v1203_v40  ;;  %1933 = vtanh.f32 %v1082_v60  ;;  %v949_v25 = vadd.f32 %v948_v52, %v2471_v7  ;;  %v686_v56 = vadd.f32 %v685_v13, %v2475_v9  ;;  %v697_v55 = vpop.f32.mrb[62].mxu0 }
 0x19b   : > { %v1916_v53 = vpop.eup %1915  ;;  %v1268_v29 = vmul.f32 0.5, %v1204_v39  ;;  %v1205_v59 = vadd.f32 1.0, %v1914_v20  ;;  %1671 = vmatprep.subr.bf16.mxu0 %v1670_v14  ;;  %1935 = vtanh.f32 %v682_v12  ;;  %v1672_v22 = vpack.c.bf16 %v1325_v5, %v1323_v0  ;;  %v699_v62 = vpop.f32.mrb[63].mxu0  ;;  %v1344_v39 = vld [vmem:[%s2832_s4] sm:$0x7] }
 0x19c   : > { %v1918_v35 = vpop.eup %1917  ;;  %v1083_v36 = vmul.f32 0.5, %v949_v25  ;;  %1937 = vtanh.f32 %v686_v56  ;;  %v951_v24 = vadd.f32 %v950_v61, %v2473_v8  ;;  %v688_v38 = vadd.f32 %v687_v33, %v2477_v11 }
 0x19d   : > { %v1920_v45 = vpop.eup %1919  ;;  %v1269_v57 = vmul.f32 0.5, %v1205_v59  ;;  %v1206_v32 = vadd.f32 1.0, %v1918_v35  ;;  %1673 = vmatpush1.bf16.xpose.msra.mxu0 %v1672_v22  ;;  %v955_v15 = vadd.f32 %v954_v23, %v2471_v7  ;;  %v692_v46 = vadd.f32 %v691_v49, %v2475_v9 }
 0x19e   : > { %v1922_v4 = vpop.eup %1921  ;;  %1939 = vtanh.f32 %v1083_v36  ;;  %v1084_v50 = vmul.f32 0.5, %v951_v24  ;;  %v957_v10 = vadd.f32 %v956_v48, %v2473_v8  ;;  %v1328_v13 = vmul.f32 %v2778_v18, %v2774_v6 }
 0x19f   : > { %v1924_v34 = vpop.eup %1923  ;;  %v1270_v41 = vmul.f32 0.5, %v1206_v32  ;;  %1941 = vtanh.f32 %v688_v38  ;;  %v1085_v27 = vmul.f32 0.5, %v955_v15  ;;  %v1330_v37 = vmul.f32 %v1912_v63, %v1266_v19 }
 0x1a0   : > { %v1926_v33 = vpop.eup %1925  ;;  %v1207_v30 = vadd.f32 1.0, %v1924_v34  ;;  %1943 = vtanh.f32 %v1084_v50  ;;  %v1086_v31 = vmul.f32 0.5, %v957_v10  ;;  %v694_v7 = vadd.f32 %v693_v16, %v2477_v11 }
 0x1a1   : > { %v1928_v54 = vpop.eup %1927  ;;  %v1208_v52 = vadd.f32 1.0, %v1926_v33  ;;  %1945 = vtanh.f32 %v1085_v27  ;;  %v1674_v28 = vpack.c.bf16 %v1330_v37, %v1328_v13  ;;  %v1327_v8 = vmul.f32 %v2767_v42, %v2769_v43  ;;  %v1343_v43 = vld [vmem:[%s2831_s3] sm:$0x77] }
 0x1a2   : > { %v1930_v26 = vpop.eup %1929  ;;  %v1271_v6 = vmul.f32 0.5, %v1207_v30  ;;  %1947 = vtanh.f32 %v692_v46  ;;  %v1329_v18 = vmul.f32 %v2781_v51, %v2783_v58  ;;  %v698_v61 = vadd.f32 %v697_v55, %v2475_v9 }
 0x1a3   : > { %v1932_v19 = vpop.eup %1931  ;;  %v1272_v47 = vmul.f32 0.5, %v1208_v52  ;;  %1949 = vtanh.f32 %v1086_v31  ;;  %1675 = vmatprep.subr.bf16.mxu0 %v1674_v28  ;;  %v700_v2 = vadd.f32 %v699_v62, %v2477_v11  ;;  %v1332_v49 = vmul.f32 %v1920_v45, %v1268_v29 }
 0x1a4   : > { %v1934_v3 = vpop.eup %1933  ;;  %v1209_v44 = vadd.f32 1.0, %v1932_v19  ;;  %1951 = vtanh.f32 %v694_v7  ;;  %v1676_v1 = vpack.c.bf16 %v1329_v18, %v1327_v8  ;;  %v1334_v42 = vmul.f32 %v1928_v54, %v1270_v41 }
 0x1a5   : > { %v1936_v12 = vpop.eup %1935  ;;  %v1210_v51 = vadd.f32 1.0, %v1934_v3  ;;  %1953 = vtanh.f32 %v698_v61  ;;  %v1331_v9 = vmul.f32 %v1916_v53, %v2795_v21  ;;  %v1333_v58 = vmul.f32 %v1922_v4, %v1269_v57 }
 0x1a6   : > { %v1938_v16 = vpop.eup %1937  ;;  %v1273_v17 = vmul.f32 0.5, %v1209_v44  ;;  %1677 = vmatpush1.bf16.xpose.msra.mxu0 %v1676_v1  ;;  %1955 = vtanh.f32 %v700_v2  ;;  %v1678_v11 = vpack.c.bf16 %v1334_v42, %v1332_v49  ;;  %v1336_v40 = vmul.f32 %v1936_v12, %v1272_v47 }
 0x1a7   : > { %v1274_v60 = vmul.f32 0.5, %v1210_v51  ;;  %v1680_v0 = vpack.c.bf16 %v1333_v58, %v1331_v9  ;;  %v1335_v23 = vmul.f32 %v1930_v26, %v1271_v6  ;;  %v1351_v63 = vcombine.high %v1343_v43, %v1343_v43 }
 0x1a8   : > { %v1940_v14 = vpop.eup %1939  ;;  %1679 = vmatprep.subr.bf16.mxu0 %v1678_v11  ;;  %v1337_v5 = vmul.f32 %v1938_v16, %v1273_v17  ;;  %v1965_v21 = vmov 0  }
 0x1a9   : > { %v1942_v48 = vpop.eup %1941  ;;  %v1211_v20 = vadd.f32 1.0, %v1940_v14  ;;  %1417 = vmatprep.mubr.f32.mxu0 %v1351_v63  ;;  %1699 = vset.pattern.permute.xlu0 %v1965_v21 }
 0x1aa   : > { %v1944_v25 = vpop.eup %1943  ;;  %v1338_v56 = vmul.f32 %v1942_v48, %v1274_v60  ;;  %v1684_v55 = vpack.c.bf16 %v1337_v5, %v1335_v23  ;;  %1347 = vperm.xlu0 %1699, %v1344_v39  }
 0x1ab   : > { %v1946_v53 = vpop.eup %1945  ;;  %v1275_v29 = vmul.f32 0.5, %v1211_v20  ;;  %v1212_v59 = vadd.f32 1.0, %v1944_v25 }
 0x1ac   : > { %v1948_v22 = vpop.eup %1947  ;;  %v1213_v62 = vadd.f32 1.0, %v1946_v53  ;;  %v1682_v35 = vpack.c.bf16 %v1338_v56, %v1336_v40 }
 0x1ad   : > { %v1950_v36 = vpop.eup %1949  ;;  %v1276_v24 = vmul.f32 0.5, %v1212_v59  ;;  %v1339_v38 = vmul.f32 %v1948_v22, %v1275_v29 }
 0x1ae   : > { %v1952_v45 = vpop.eup %1951  ;;  %v1277_v57 = vmul.f32 0.5, %v1213_v62  ;;  %v1214_v32 = vadd.f32 1.0, %v1950_v36  ;;  %1681 = vmatpush1.bf16.xpose.msra.mxu0 %v1680_v0 }
 0x1af   : > { %v1954_v15 = vpop.eup %1953  ;;  %1683 = vmatprep.subr.bf16.mxu0 %v1682_v35  ;;  %v1340_v46 = vmul.f32 %v1952_v45, %v1276_v24 }
 0x1b0   : > { %v1956_v4 = vpop.eup %1955  ;;  %v1278_v50 = vmul.f32 0.5, %v1214_v32  ;;  %v1341_v10 = vmul.f32 %v1954_v15, %v1277_v57 }
 0x1b2   : > { %v1342_v13 = vmul.f32 %v1956_v4, %v1278_v50  ;;  %v1688_v34 = vpack.c.bf16 %v1341_v10, %v1339_v38 }
 0x1b4   : > { %v1686_v41 = vpack.c.bf16 %v1342_v13, %v1340_v46 }
 0x1b6   : > { %1685 = vmatpush1.bf16.xpose.msra.mxu0 %v1684_v55 }
 0x1b7   : > { %1687 = vmatprep.subr.bf16.mxu0 %v1686_v41 }
 0x1be   : > { %1689 = vmatpush1.bf16.xpose.msra.mxu0 %v1688_v34 }
 0x1c5   : > { %1418 = vmatmul.mubr.f32.vlgmr.msra.gmra.mrb[64].mxu0 %v1343_v43 }
 0x229   : > { %v1348_v27 = vpop.permute.xlu0 %1347 }
 0x298   : > { %v1419_v37 = vpop.f32.mrb[64].mxu0 }
 0x299   : > { %v1420_v33 = vadd.f32 %v1419_v37, %v1348_v27  ;;  %v1421_v30 = vpop.f32.mrb[65].mxu0 }
 0x29a   : > { %v1422_v31 = vadd.f32 %v1421_v30, %v1348_v27 }
 0x29c   : > { %v1426_v7 = vcombine.low %v1420_v33, %v1422_v31 }
 0x29e   : > { %1428 = vst [vmem:[%s229_s17] sm:$0x77] %v1426_v7 }
 0x29f PF: > { %s15_s18 = sadd.s32 1, %s1963_s18  }
 0x2a0   : > { %p12_p5 = scmp.ge.s32.totalorder %s15_s18, 4  }
 0x2a2   :  { %14 = sbr.rel (!%p12_p5) target bundleno = 1 (0x1), region = 70 }

</bundles_post_ra>
